<compile_context>
chip_gen: v5e
topology: v5e:2x2
jax: 0.10.0
libtpu: 0.0.40
codegen_flags: <defaults>
</compile_context>

<pallas_src>
import functools

import jax
import jax.numpy as jnp
from jax.experimental import pallas as pl
from jax.experimental.pallas import tpu as pltpu

# ----------------------------- configuration -------------------------------
DIM = 32            # embedding dim C
HEADS = 4
HEAD_DIM = DIM // HEADS
SCALE = HEAD_DIM ** -0.5
MLP_HID = int(DIM * 4.0)
ADAPTER_DIM = 16
LN_EPS = 1e-5
BN_EPS = 1e-5
INIT_VALUES = 1e-4   # LayerScale init

B = 2                # batch
G = 8                # number of point tokens (excluding cls)
N = G + 1            # sequence length (cls + points)
N_VIEWS = 3          # center1.shape[1]
GRID_SHAPE = 4
N_CLUSTERS = 6


# -------------------- fused Pallas kernel: whole Block core -----------------
def fused_block_kernel(x_ref, mask_ref,
                       ln1w_ref, ln1b_ref, wqkv_ref, wprojg_ref, bprojg_ref,
                       ln2w_ref, ln2b_ref, w1_ref, b1_ref, w2g_ref, b2g_ref,
                       wa1_ref, ba1_ref, wa2s_ref, ba2s_ref, o_ref):
    # x laid out as (B*N, C); per-batch softmax enforced by block-diag mask.
    x = x_ref[...]                                # (BN, C)
    mask = mask_ref[...]                          # (BN, BN), 0 / -1e30

    # ---- norm1 -> attention -> proj (gamma1 folded) -> residual ----
    mu = jnp.mean(x, axis=-1, keepdims=True)
    var = jnp.mean((x - mu) ** 2, axis=-1, keepdims=True)
    xn = (x - mu) * jax.lax.rsqrt(var + LN_EPS) * ln1w_ref[...] + ln1b_ref[...]

    qkv = jnp.dot(xn, wqkv_ref[...], preferred_element_type=jnp.float32)  # (BN, 3C)

    head_outs = []
    for h in range(HEADS):
        q = qkv[:, h * HEAD_DIM:(h + 1) * HEAD_DIM]
        k = qkv[:, DIM + h * HEAD_DIM:DIM + (h + 1) * HEAD_DIM]
        v = qkv[:, 2 * DIM + h * HEAD_DIM:2 * DIM + (h + 1) * HEAD_DIM]
        s = jnp.dot(q, k.T, preferred_element_type=jnp.float32) * SCALE + mask
        s = s - jnp.max(s, axis=-1, keepdims=True)
        p = jnp.exp(s)
        p = p * pl.reciprocal(jnp.sum(p, axis=-1, keepdims=True), approx=True)
        head_outs.append(jnp.dot(p, v, preferred_element_type=jnp.float32))
    attn = jnp.concatenate(head_outs, axis=-1)                             # (BN, C)

    x = x + jnp.dot(attn, wprojg_ref[...],
                    preferred_element_type=jnp.float32) + bprojg_ref[...]

    # ---- norm2 -> MLP (gamma2 folded) -> adapter (scale_factor folded) ----
    mu2 = jnp.mean(x, axis=-1, keepdims=True)
    var2 = jnp.mean((x - mu2) ** 2, axis=-1, keepdims=True)
    xn2 = (x - mu2) * jax.lax.rsqrt(var2 + LN_EPS) * ln2w_ref[...] + ln2b_ref[...]

    h1 = jnp.dot(xn2, w1_ref[...], preferred_element_type=jnp.float32) + b1_ref[...]
    h1 = 0.5 * h1 * (1.0 + jax.lax.erf(h1 * 0.7071067811865476))          # exact GELU
    x_ffn = jnp.dot(h1, w2g_ref[...], preferred_element_type=jnp.float32) + b2g_ref[...]

    a = jnp.dot(x_ffn, wa1_ref[...], preferred_element_type=jnp.float32) + ba1_ref[...]
    a = a * jax.nn.sigmoid(1.702 * a)                                      # QuickGELU
    a = jnp.dot(a, wa2s_ref[...], preferred_element_type=jnp.float32) + ba2s_ref[...]

    o_ref[...] = x + x_ffn + a


def run_fused_block(x, fp):
    Bx, Nx, Cx = x.shape
    x2 = x.reshape(Bx * Nx, Cx)
    # block-diagonal additive mask keeps softmax strictly per-batch
    bid = jnp.repeat(jnp.arange(Bx, dtype=jnp.int32), Nx)
    attn_mask = jnp.where(bid[:, None] == bid[None, :], 0.0, -1e30).astype(jnp.float32)

    out = pl.pallas_call(
        fused_block_kernel,
        out_shape=jax.ShapeDtypeStruct((Bx * Nx, Cx), jnp.float32),
    )(x2, attn_mask,
      fp['ln1_w'], fp['ln1_b'], fp['wqkv'], fp['wproj_g'], fp['bproj_g'],
      fp['ln2_w'], fp['ln2_b'], fp['w1'], fp['b1'], fp['w2_g'], fp['b2_g'],
      fp['wa1'], fp['ba1'], fp['wa2_s'], fp['ba2_s'])
    return out.reshape(Bx, Nx, Cx)


# ------------------------------ JAX glue ops --------------------------------
def bn_gelu(x, p):
    # BatchNorm1d in eval mode (running_mean=0, running_var=1) + exact GELU.
    y = (x - p['rm']) * jax.lax.rsqrt(p['rv'] + BN_EPS) * p['w'] + p['b']
    return jax.nn.gelu(y, approximate=False)


def segment_reduce(src, seg_ids, num_segments):
    """Returns (max, mean) per segment; empty segments -> 0 (torch_scatter convention)."""
    mx = jax.ops.segment_max(src, seg_ids, num_segments=num_segments)
    mx = jnp.where(jnp.isneginf(mx), 0.0, mx)
    cnt = jax.ops.segment_sum(jnp.ones((src.shape[0], 1), src.dtype),
                              seg_ids, num_segments=num_segments)
    mean = jax.ops.segment_sum(src, seg_ids, num_segments=num_segments) / jnp.maximum(cnt, 1.0)
    return mx, mean


def cosine_sim(a, b, eps=1e-8):
    num = jnp.sum(a * b, axis=-1)
    na = jnp.maximum(jnp.linalg.norm(a, axis=-1), eps)
    nb = jnp.maximum(jnp.linalg.norm(b, axis=-1), eps)
    return num / (na * nb)


# TODO(synk): attn1[i]/norm3[i] are external modules passed into Block.forward
# whose architecture is not defined in the provided code; modeled here as
# LayerNorm + single-head masked self-attention, batched over the view axis.
def view_branch_batched(flat_x, mask, flat_grid_index, dim_size, a1p, n3p, bn2p):
    V = mask.shape[0]
    M, C = flat_x.shape

    # norm3 (stacked per-view LayerNorm of the shared flat_x)
    mu = jnp.mean(flat_x, axis=-1, keepdims=True)
    var = jnp.mean((flat_x - mu) ** 2, axis=-1, keepdims=True)
    fxn = (flat_x - mu) * jax.lax.rsqrt(var + LN_EPS)
    nx = fxn[None] * n3p['w'][:, None, :] + n3p['b'][:, None, :]           # (V, M, C)

    # attn1: single-head masked self-attention, batched over views
    q = jnp.einsum('vmc,vcd->vmd', nx, a1p['wq'])
    k = jnp.einsum('vmc,vcd->vmd', nx, a1p['wk'])
    v = jnp.einsum('vmc,vcd->vmd', nx, a1p['wv'])
    s = jnp.einsum('vqd,vkd->vqk', q, k) * (C ** -0.5) + mask
    p = jax.nn.softmax(s, axis=-1)
    att = jnp.einsum('vqk,vkd->vqd', p, v)
    att = jnp.einsum('vmd,vdc->vmc', att, a1p['wo'])
    fx = att + flat_x[None]                                                # (V, M, C)

    # scatter max / mean batched across views via segment-id offsets
    seg = flat_grid_index + (jnp.arange(V, dtype=flat_grid_index.dtype) * dim_size)[:, None]
    seg = seg.reshape(-1)
    src = fx.reshape(V * M, C)
    nseg = V * dim_size
    mx = jax.ops.segment_max(src, seg, num_segments=nseg)
    mx = jnp.where(jnp.isneginf(mx), 0.0, mx)
    cnt = jax.ops.segment_sum(jnp.ones((V * M, 1), src.dtype), seg, num_segments=nseg)
    mean = jax.ops.segment_sum(src, seg, num_segments=nseg) / jnp.maximum(cnt, 1.0)
    pooled = (mx + mean).reshape(V, dim_size, C)

    # BatchNorm1d (eval) + exact GELU, batched over views
    y = (pooled - bn2p['rm'][:, None, :]) * jax.lax.rsqrt(bn2p['rv'][:, None, :] + BN_EPS)
    y = y * bn2p['w'][:, None, :] + bn2p['b'][:, None, :]
    y = jax.nn.gelu(y, approximate=False)

    # gather back per view
    d2 = y[jnp.arange(V)[:, None], flat_grid_index]                        # (V, M, C)
    return d2


# ------------------------------ full forward --------------------------------
@functools.partial(jax.jit, static_argnames=("grid_shape",))
def block_forward(x, fp, center1, idx_ptr, sorted_cluster_indices, cluster,
                  mask, flat_grid_index, coef_pro, *, grid_shape):
    # --- core transformer block (single fused Pallas kernel) ---
    x = run_fused_block(x, fp)

    Bx, Gp1, C = x.shape
    cls_x = x[:, 0]
    xp = x[:, 1:]
    feat = xp.reshape(-1, C)

    # --- 3D branch: segment_csr max/mean ---
    n_seg = idx_ptr.shape[0] - 1
    src = feat[sorted_cluster_indices]
    seg_ids = jnp.searchsorted(idx_ptr, jnp.arange(src.shape[0]), side='right') - 1
    feat_max, feat_mean = segment_reduce(src, seg_ids, n_seg)
    x_3d = bn_gelu(feat_max + feat_mean, fp['bn3d'])[cluster].reshape(xp.shape)

    # --- 2D view branches, batched over the view axis ---
    V = center1.shape[1]
    dim_size = center1.shape[0] * grid_shape * grid_shape
    d2 = view_branch_batched(feat, mask, flat_grid_index, dim_size,
                             fp['attn1'], fp['norm3'], fp['bn2d_s'])       # (V, M, C)
    d2_views = d2.reshape(V, Bx, Gp1 - 1, C)

    x_sup = jnp.transpose(d2_views, (1, 0, 2, 3))                          # (B, V, G, C)
    sims = (cosine_sim(d2_views, x_3d[None]) + 1.0) / 2.0                  # (V, B, G)
    sims = jnp.transpose(sims, (1, 0, 2))                                  # (B, V, G)
    sims = sims / jnp.sum(sims, axis=1, keepdims=True)
    x_sup_weight = jnp.sum(x_sup * sims[..., None], axis=1)                # (B, G, C)

    xp = xp + coef_pro * x_sup_weight
    return jnp.concatenate([cls_x[:, None, :], xp], axis=1)


# ------------------------------- init / fold --------------------------------
def init_params(key):
    ks = jax.random.split(key, 20)
    nrm = lambda k, shp, s=0.02: (s * jax.random.normal(k, shp)).astype(jnp.float32)
    p = {
        'ln1_w': jnp.ones((1, DIM), jnp.float32),
        'ln1_b': jnp.zeros((1, DIM), jnp.float32),
        'wqkv': nrm(ks[0], (DIM, 3 * DIM)),
        'wproj': nrm(ks[1], (DIM, DIM)),
        'bproj': jnp.zeros((1, DIM), jnp.float32),
        'gamma1': jnp.full((1, DIM), INIT_VALUES, jnp.float32),
        'ln2_w': jnp.ones((1, DIM), jnp.float32),
        'ln2_b': jnp.zeros((1, DIM), jnp.float32),
        'w1': nrm(ks[2], (DIM, MLP_HID)),
        'b1': jnp.zeros((1, MLP_HID), jnp.float32),
        'w2': nrm(ks[3], (MLP_HID, DIM)),
        'b2': jnp.zeros((1, DIM), jnp.float32),
        'gamma2': jnp.full((1, DIM), INIT_VALUES, jnp.float32),
        'wa1': nrm(ks[4], (DIM, ADAPTER_DIM)),
        'ba1': (1e-6 * jax.random.normal(ks[5], (1, ADAPTER_DIM))).astype(jnp.float32),
        'wa2': nrm(ks[6], (ADAPTER_DIM, DIM)),
        'ba2': (1e-6 * jax.random.normal(ks[7], (1, DIM))).astype(jnp.float32),
        'bn3d': {'w': jnp.ones((DIM,), jnp.float32), 'b': jnp.zeros((DIM,), jnp.float32),
                 'rm': jnp.zeros((DIM,), jnp.float32), 'rv': jnp.ones((DIM,), jnp.float32)},
        'bn2d': [{'w': jnp.ones((DIM,), jnp.float32), 'b': jnp.zeros((DIM,), jnp.float32),
                  'rm': jnp.zeros((DIM,), jnp.float32), 'rv': jnp.ones((DIM,), jnp.float32)}
                 for _ in range(6)],
    }
    ext_keys = jax.random.split(ks[8], 4 * N_VIEWS)
    attn1_params = [{'wq': nrm(ext_keys[4 * i + 0], (DIM, DIM)),
                     'wk': nrm(ext_keys[4 * i + 1], (DIM, DIM)),
                     'wv': nrm(ext_keys[4 * i + 2], (DIM, DIM)),
                     'wo': nrm(ext_keys[4 * i + 3], (DIM, DIM))} for i in range(N_VIEWS)]
    norm3_params = [{'w': jnp.ones((DIM,), jnp.float32),
                     'b': jnp.zeros((DIM,), jnp.float32)} for _ in range(N_VIEWS)]
    return p, attn1_params, norm3_params


def fold_params(p, attn1_params, norm3_params, scale_factor, n_views):
    """One-time constant folding: LayerScale gammas & scale_factor into weights;
    stack per-view external-module / BN params for batched evaluation."""
    sf = jnp.float32(scale_factor)
    fp = {
        'ln1_w': p['ln1_w'], 'ln1_b': p['ln1_b'],
        'wqkv': p['wqkv'],
        'wproj_g': p['wproj'] * p['gamma1'],
        'bproj_g': p['bproj'] * p['gamma1'],
        'ln2_w': p['ln2_w'], 'ln2_b': p['ln2_b'],
        'w1': p['w1'], 'b1': p['b1'],
        'w2_g': p['w2'] * p['gamma2'],
        'b2_g': p['b2'] * p['gamma2'],
        'wa1': p['wa1'], 'ba1': p['ba1'],
        'wa2_s': p['wa2'] * sf,
        'ba2_s': p['ba2'] * sf,
        'bn3d': p['bn3d'],
        'bn2d_s': {k: jnp.stack([p['bn2d'][i][k] for i in range(n_views)], 0)
                   for k in ('w', 'b', 'rm', 'rv')},
        'attn1': {k: jnp.stack([ap[k] for ap in attn1_params], 0)
                  for k in ('wq', 'wk', 'wv', 'wo')},
        'norm3': {k: jnp.stack([np_[k] for np_ in norm3_params], 0)
                  for k in ('w', 'b')},
    }
    return fp


# ---------------------------------- main -------------------------------------
if __name__ == "__main__":
    key = jax.random.PRNGKey(0)
    k_p, k_x, k_c, k_g = jax.random.split(key, 4)

    params, attn1_params, norm3_params = init_params(k_p)
    scale_factor = 0.5
    coef_pro = 0.1
    folded = fold_params(params, attn1_params, norm3_params, scale_factor, N_VIEWS)

    x = jax.random.normal(k_x, (B, N, DIM), dtype=jnp.float32)
    center1 = jax.random.normal(k_c, (B, N_VIEWS, 4, 3), dtype=jnp.float32)

    # clustering structure for segment_csr (all 6 clusters non-empty)
    M = B * G
    cluster = jnp.array([0, 1, 2, 3, 4, 5, 0, 1, 2, 3, 4, 5, 0, 1, 2, 3], dtype=jnp.int32)
    sorted_cluster_indices = jnp.argsort(cluster)
    counts = jnp.bincount(cluster, length=N_CLUSTERS)
    idx_ptr = jnp.concatenate([jnp.zeros((1,), jnp.int32),
                               jnp.cumsum(counts).astype(jnp.int32)])

    # per-view flat grid indices: each point maps into its own batch's grid cells
    base = jnp.repeat(jnp.arange(B, dtype=jnp.int32) * GRID_SHAPE * GRID_SHAPE, G)
    gkeys = jax.random.split(k_g, N_VIEWS)
    flat_grid_index = jnp.stack(
        [base + jax.random.randint(gkeys[i], (M,), 0, GRID_SHAPE * GRID_SHAPE, dtype=jnp.int32)
         for i in range(N_VIEWS)], 0)

    # block-diagonal (per-batch) additive attention mask for the external attn1 modules
    bid = jnp.repeat(jnp.arange(B), G)
    same = (bid[:, None] == bid[None, :])
    mask_i = jnp.where(same, 0.0, -1e9).astype(jnp.float32)
    mask = jnp.stack([mask_i] * N_VIEWS, 0)

    out = block_forward(x, folded, center1, idx_ptr, sorted_cluster_indices, cluster,
                        mask, flat_grid_index, coef_pro, grid_shape=GRID_SHAPE)
    out = jax.block_until_ready(out)
    assert out.shape == (B, N, DIM), out.shape
    assert bool(jnp.all(jnp.isfinite(out)))
    print("KERNEL_OK")
</pallas_src>

<mosaic_0001>
module attributes {stable_mosaic.version = 11 : i64} {
  func.func @fused_block_kernel(%arg0: memref<18x32xf32, #tpu.memory_space<vmem>>, %arg1: memref<18x18xf32, #tpu.memory_space<vmem>>, %arg2: memref<1x32xf32, #tpu.memory_space<vmem>>, %arg3: memref<1x32xf32, #tpu.memory_space<vmem>>, %arg4: memref<32x96xf32, #tpu.memory_space<vmem>>, %arg5: memref<32x32xf32, #tpu.memory_space<vmem>>, %arg6: memref<1x32xf32, #tpu.memory_space<vmem>>, %arg7: memref<1x32xf32, #tpu.memory_space<vmem>>, %arg8: memref<1x32xf32, #tpu.memory_space<vmem>>, %arg9: memref<32x128xf32, #tpu.memory_space<vmem>>, %arg10: memref<1x128xf32, #tpu.memory_space<vmem>>, %arg11: memref<128x32xf32, #tpu.memory_space<vmem>>, %arg12: memref<1x32xf32, #tpu.memory_space<vmem>>, %arg13: memref<32x16xf32, #tpu.memory_space<vmem>>, %arg14: memref<1x16xf32, #tpu.memory_space<vmem>>, %arg15: memref<16x32xf32, #tpu.memory_space<vmem>>, %arg16: memref<1x32xf32, #tpu.memory_space<vmem>>, %arg17: memref<18x32xf32, #tpu.memory_space<vmem>>) attributes {dimension_semantics = [], scalar_prefetch = 0 : i64, scratch_operands = 0 : i64, tpu.core_type = #tpu.core_type<tc>} {
    %c0 = arith.constant 0 : index
    %c0_0 = arith.constant 0 : index
    %0 = vector.load %arg0[%c0, %c0_0] : memref<18x32xf32, #tpu.memory_space<vmem>>, vector<18x32xf32>
    %c0_1 = arith.constant 0 : index
    %c0_2 = arith.constant 0 : index
    %1 = vector.load %arg1[%c0_1, %c0_2] : memref<18x18xf32, #tpu.memory_space<vmem>>, vector<18x18xf32>
    %cst = arith.constant dense<0.000000e+00> : vector<18xf32>
    %2 = vector.multi_reduction <add>, %0, %cst [1] : vector<18x32xf32> to vector<18xf32>
    %3 = vector.shape_cast %2 : vector<18xf32> to vector<18x1xf32>
    %cst_3 = arith.constant 3.200000e+01 : f32
    %4 = vector.broadcast %cst_3 : f32 to vector<18x1xf32>
    %5 = arith.divf %3, %4 : vector<18x1xf32>
    %6 = vector.broadcast %5 : vector<18x1xf32> to vector<18x32xf32>
    %7 = arith.subf %0, %6 : vector<18x32xf32>
    %8 = arith.mulf %7, %7 : vector<18x32xf32>
    %cst_4 = arith.constant dense<0.000000e+00> : vector<18xf32>
    %9 = vector.multi_reduction <add>, %8, %cst_4 [1] : vector<18x32xf32> to vector<18xf32>
    %10 = vector.shape_cast %9 : vector<18xf32> to vector<18x1xf32>
    %cst_5 = arith.constant 3.200000e+01 : f32
    %11 = vector.broadcast %cst_5 : f32 to vector<18x1xf32>
    %12 = arith.divf %10, %11 : vector<18x1xf32>
    %13 = vector.broadcast %5 : vector<18x1xf32> to vector<18x32xf32>
    %14 = arith.subf %0, %13 : vector<18x32xf32>
    %cst_6 = arith.constant 9.99999974E-6 : f32
    %15 = vector.broadcast %cst_6 : f32 to vector<18x1xf32>
    %16 = arith.addf %12, %15 : vector<18x1xf32>
    %17 = math.rsqrt %16 : vector<18x1xf32>
    %18 = vector.broadcast %17 : vector<18x1xf32> to vector<18x32xf32>
    %19 = arith.mulf %14, %18 : vector<18x32xf32>
    %c0_7 = arith.constant 0 : index
    %c0_8 = arith.constant 0 : index
    %20 = vector.load %arg2[%c0_7, %c0_8] : memref<1x32xf32, #tpu.memory_space<vmem>>, vector<1x32xf32>
    %21 = vector.broadcast %20 : vector<1x32xf32> to vector<18x32xf32>
    %22 = arith.mulf %19, %21 : vector<18x32xf32>
    %c0_9 = arith.constant 0 : index
    %c0_10 = arith.constant 0 : index
    %23 = vector.load %arg3[%c0_9, %c0_10] : memref<1x32xf32, #tpu.memory_space<vmem>>, vector<1x32xf32>
    %24 = vector.broadcast %23 : vector<1x32xf32> to vector<18x32xf32>
    %25 = arith.addf %22, %24 : vector<18x32xf32>
    %c0_11 = arith.constant 0 : index
    %c0_12 = arith.constant 0 : index
    %26 = vector.load %arg4[%c0_11, %c0_12] : memref<32x96xf32, #tpu.memory_space<vmem>>, vector<32x96xf32>
    %cst_13 = arith.constant dense<0.000000e+00> : vector<18x96xf32>
    %27 = tpu.matmul %25, %26, %cst_13 {dimension_numbers = #tpu.dot_dimension_numbers<[1], [0], [0], [1], [0, 0, 1, 1], [], []>} : vector<18x32xf32>, vector<32x96xf32>, vector<18x96xf32> -> vector<18x96xf32>
    %28 = vector.extract_strided_slice %27 {offsets = [0, 0], sizes = [18, 8], strides = [1, 1]} : vector<18x96xf32> to vector<18x8xf32>
    %29 = vector.extract_strided_slice %27 {offsets = [0, 32], sizes = [18, 8], strides = [1, 1]} : vector<18x96xf32> to vector<18x8xf32>
    %30 = vector.extract_strided_slice %27 {offsets = [0, 64], sizes = [18, 8], strides = [1, 1]} : vector<18x96xf32> to vector<18x8xf32>
    %31 = tpu.transpose %29, [1, 0] : vector<18x8xf32> -> vector<8x18xf32>
    %cst_14 = arith.constant dense<0.000000e+00> : vector<18x18xf32>
    %32 = tpu.matmul %28, %31, %cst_14 {dimension_numbers = #tpu.dot_dimension_numbers<[1], [0], [0], [1], [0, 0, 1, 1], [], []>} : vector<18x8xf32>, vector<8x18xf32>, vector<18x18xf32> -> vector<18x18xf32>
    %cst_15 = arith.constant 0.353553385 : f32
    %33 = vector.broadcast %cst_15 : f32 to vector<18x18xf32>
    %34 = arith.mulf %32, %33 : vector<18x18xf32>
    %35 = arith.addf %34, %1 : vector<18x18xf32>
    %cst_16 = arith.constant dense<0xFF800000> : vector<18xf32>
    %36 = vector.multi_reduction <maximumf>, %35, %cst_16 [1] : vector<18x18xf32> to vector<18xf32>
    %37 = vector.shape_cast %36 : vector<18xf32> to vector<18x1xf32>
    %38 = vector.broadcast %37 : vector<18x1xf32> to vector<18x18xf32>
    %39 = arith.subf %35, %38 : vector<18x18xf32>
    %40 = math.exp %39 : vector<18x18xf32>
    %cst_17 = arith.constant dense<0.000000e+00> : vector<18xf32>
    %41 = vector.multi_reduction <add>, %40, %cst_17 [1] : vector<18x18xf32> to vector<18xf32>
    %42 = vector.shape_cast %41 : vector<18xf32> to vector<18x1xf32>
    %43 = tpu.reciprocal %42 {approx = true} : vector<18x1xf32> -> vector<18x1xf32>
    %44 = vector.broadcast %43 : vector<18x1xf32> to vector<18x18xf32>
    %45 = arith.mulf %40, %44 : vector<18x18xf32>
    %cst_18 = arith.constant dense<0.000000e+00> : vector<18x8xf32>
    %46 = tpu.matmul %45, %30, %cst_18 {dimension_numbers = #tpu.dot_dimension_numbers<[1], [0], [0], [1], [0, 0, 1, 1], [], []>} : vector<18x18xf32>, vector<18x8xf32>, vector<18x8xf32> -> vector<18x8xf32>
    %47 = vector.extract_strided_slice %27 {offsets = [0, 8], sizes = [18, 8], strides = [1, 1]} : vector<18x96xf32> to vector<18x8xf32>
    %48 = vector.extract_strided_slice %27 {offsets = [0, 40], sizes = [18, 8], strides = [1, 1]} : vector<18x96xf32> to vector<18x8xf32>
    %49 = vector.extract_strided_slice %27 {offsets = [0, 72], sizes = [18, 8], strides = [1, 1]} : vector<18x96xf32> to vector<18x8xf32>
    %50 = tpu.transpose %48, [1, 0] : vector<18x8xf32> -> vector<8x18xf32>
    %cst_19 = arith.constant dense<0.000000e+00> : vector<18x18xf32>
    %51 = tpu.matmul %47, %50, %cst_19 {dimension_numbers = #tpu.dot_dimension_numbers<[1], [0], [0], [1], [0, 0, 1, 1], [], []>} : vector<18x8xf32>, vector<8x18xf32>, vector<18x18xf32> -> vector<18x18xf32>
    %cst_20 = arith.constant 0.353553385 : f32
    %52 = vector.broadcast %cst_20 : f32 to vector<18x18xf32>
    %53 = arith.mulf %51, %52 : vector<18x18xf32>
    %54 = arith.addf %53, %1 : vector<18x18xf32>
    %cst_21 = arith.constant dense<0xFF800000> : vector<18xf32>
    %55 = vector.multi_reduction <maximumf>, %54, %cst_21 [1] : vector<18x18xf32> to vector<18xf32>
    %56 = vector.shape_cast %55 : vector<18xf32> to vector<18x1xf32>
    %57 = vector.broadcast %56 : vector<18x1xf32> to vector<18x18xf32>
    %58 = arith.subf %54, %57 : vector<18x18xf32>
    %59 = math.exp %58 : vector<18x18xf32>
    %cst_22 = arith.constant dense<0.000000e+00> : vector<18xf32>
    %60 = vector.multi_reduction <add>, %59, %cst_22 [1] : vector<18x18xf32> to vector<18xf32>
    %61 = vector.shape_cast %60 : vector<18xf32> to vector<18x1xf32>
    %62 = tpu.reciprocal %61 {approx = true} : vector<18x1xf32> -> vector<18x1xf32>
    %63 = vector.broadcast %62 : vector<18x1xf32> to vector<18x18xf32>
    %64 = arith.mulf %59, %63 : vector<18x18xf32>
    %cst_23 = arith.constant dense<0.000000e+00> : vector<18x8xf32>
    %65 = tpu.matmul %64, %49, %cst_23 {dimension_numbers = #tpu.dot_dimension_numbers<[1], [0], [0], [1], [0, 0, 1, 1], [], []>} : vector<18x18xf32>, vector<18x8xf32>, vector<18x8xf32> -> vector<18x8xf32>
    %66 = vector.extract_strided_slice %27 {offsets = [0, 16], sizes = [18, 8], strides = [1, 1]} : vector<18x96xf32> to vector<18x8xf32>
    %67 = vector.extract_strided_slice %27 {offsets = [0, 48], sizes = [18, 8], strides = [1, 1]} : vector<18x96xf32> to vector<18x8xf32>
    %68 = vector.extract_strided_slice %27 {offsets = [0, 80], sizes = [18, 8], strides = [1, 1]} : vector<18x96xf32> to vector<18x8xf32>
    %69 = tpu.transpose %67, [1, 0] : vector<18x8xf32> -> vector<8x18xf32>
    %cst_24 = arith.constant dense<0.000000e+00> : vector<18x18xf32>
    %70 = tpu.matmul %66, %69, %cst_24 {dimension_numbers = #tpu.dot_dimension_numbers<[1], [0], [0], [1], [0, 0, 1, 1], [], []>} : vector<18x8xf32>, vector<8x18xf32>, vector<18x18xf32> -> vector<18x18xf32>
    %cst_25 = arith.constant 0.353553385 : f32
    %71 = vector.broadcast %cst_25 : f32 to vector<18x18xf32>
    %72 = arith.mulf %70, %71 : vector<18x18xf32>
    %73 = arith.addf %72, %1 : vector<18x18xf32>
    %cst_26 = arith.constant dense<0xFF800000> : vector<18xf32>
    %74 = vector.multi_reduction <maximumf>, %73, %cst_26 [1] : vector<18x18xf32> to vector<18xf32>
    %75 = vector.shape_cast %74 : vector<18xf32> to vector<18x1xf32>
    %76 = vector.broadcast %75 : vector<18x1xf32> to vector<18x18xf32>
    %77 = arith.subf %73, %76 : vector<18x18xf32>
    %78 = math.exp %77 : vector<18x18xf32>
    %cst_27 = arith.constant dense<0.000000e+00> : vector<18xf32>
    %79 = vector.multi_reduction <add>, %78, %cst_27 [1] : vector<18x18xf32> to vector<18xf32>
    %80 = vector.shape_cast %79 : vector<18xf32> to vector<18x1xf32>
    %81 = tpu.reciprocal %80 {approx = true} : vector<18x1xf32> -> vector<18x1xf32>
    %82 = vector.broadcast %81 : vector<18x1xf32> to vector<18x18xf32>
    %83 = arith.mulf %78, %82 : vector<18x18xf32>
    %cst_28 = arith.constant dense<0.000000e+00> : vector<18x8xf32>
    %84 = tpu.matmul %83, %68, %cst_28 {dimension_numbers = #tpu.dot_dimension_numbers<[1], [0], [0], [1], [0, 0, 1, 1], [], []>} : vector<18x18xf32>, vector<18x8xf32>, vector<18x8xf32> -> vector<18x8xf32>
    %85 = vector.extract_strided_slice %27 {offsets = [0, 24], sizes = [18, 8], strides = [1, 1]} : vector<18x96xf32> to vector<18x8xf32>
    %86 = vector.extract_strided_slice %27 {offsets = [0, 56], sizes = [18, 8], strides = [1, 1]} : vector<18x96xf32> to vector<18x8xf32>
    %87 = vector.extract_strided_slice %27 {offsets = [0, 88], sizes = [18, 8], strides = [1, 1]} : vector<18x96xf32> to vector<18x8xf32>
    %88 = tpu.transpose %86, [1, 0] : vector<18x8xf32> -> vector<8x18xf32>
    %cst_29 = arith.constant dense<0.000000e+00> : vector<18x18xf32>
    %89 = tpu.matmul %85, %88, %cst_29 {dimension_numbers = #tpu.dot_dimension_numbers<[1], [0], [0], [1], [0, 0, 1, 1], [], []>} : vector<18x8xf32>, vector<8x18xf32>, vector<18x18xf32> -> vector<18x18xf32>
    %cst_30 = arith.constant 0.353553385 : f32
    %90 = vector.broadcast %cst_30 : f32 to vector<18x18xf32>
    %91 = arith.mulf %89, %90 : vector<18x18xf32>
    %92 = arith.addf %91, %1 : vector<18x18xf32>
    %cst_31 = arith.constant dense<0xFF800000> : vector<18xf32>
    %93 = vector.multi_reduction <maximumf>, %92, %cst_31 [1] : vector<18x18xf32> to vector<18xf32>
    %94 = vector.shape_cast %93 : vector<18xf32> to vector<18x1xf32>
    %95 = vector.broadcast %94 : vector<18x1xf32> to vector<18x18xf32>
    %96 = arith.subf %92, %95 : vector<18x18xf32>
    %97 = math.exp %96 : vector<18x18xf32>
    %cst_32 = arith.constant dense<0.000000e+00> : vector<18xf32>
    %98 = vector.multi_reduction <add>, %97, %cst_32 [1] : vector<18x18xf32> to vector<18xf32>
    %99 = vector.shape_cast %98 : vector<18xf32> to vector<18x1xf32>
    %100 = tpu.reciprocal %99 {approx = true} : vector<18x1xf32> -> vector<18x1xf32>
    %101 = vector.broadcast %100 : vector<18x1xf32> to vector<18x18xf32>
    %102 = arith.mulf %97, %101 : vector<18x18xf32>
    %cst_33 = arith.constant dense<0.000000e+00> : vector<18x8xf32>
    %103 = tpu.matmul %102, %87, %cst_33 {dimension_numbers = #tpu.dot_dimension_numbers<[1], [0], [0], [1], [0, 0, 1, 1], [], []>} : vector<18x18xf32>, vector<18x8xf32>, vector<18x8xf32> -> vector<18x8xf32>
    %104 = tpu.concatenate %46, %65, %84, %103 in 1 : vector<18x8xf32>, vector<18x8xf32>, vector<18x8xf32>, vector<18x8xf32> -> vector<18x32xf32>
    %c0_34 = arith.constant 0 : index
    %c0_35 = arith.constant 0 : index
    %105 = vector.load %arg5[%c0_34, %c0_35] : memref<32x32xf32, #tpu.memory_space<vmem>>, vector<32x32xf32>
    %cst_36 = arith.constant dense<0.000000e+00> : vector<18x32xf32>
    %106 = tpu.matmul %104, %105, %cst_36 {dimension_numbers = #tpu.dot_dimension_numbers<[1], [0], [0], [1], [0, 0, 1, 1], [], []>} : vector<18x32xf32>, vector<32x32xf32>, vector<18x32xf32> -> vector<18x32xf32>
    %107 = arith.addf %0, %106 : vector<18x32xf32>
    %c0_37 = arith.constant 0 : index
    %c0_38 = arith.constant 0 : index
    %108 = vector.load %arg6[%c0_37, %c0_38] : memref<1x32xf32, #tpu.memory_space<vmem>>, vector<1x32xf32>
    %109 = vector.broadcast %108 : vector<1x32xf32> to vector<18x32xf32>
    %110 = arith.addf %107, %109 : vector<18x32xf32>
    %cst_39 = arith.constant dense<0.000000e+00> : vector<18xf32>
    %111 = vector.multi_reduction <add>, %110, %cst_39 [1] : vector<18x32xf32> to vector<18xf32>
    %112 = vector.shape_cast %111 : vector<18xf32> to vector<18x1xf32>
    %cst_40 = arith.constant 3.200000e+01 : f32
    %113 = vector.broadcast %cst_40 : f32 to vector<18x1xf32>
    %114 = arith.divf %112, %113 : vector<18x1xf32>
    %115 = vector.broadcast %114 : vector<18x1xf32> to vector<18x32xf32>
    %116 = arith.subf %110, %115 : vector<18x32xf32>
    %117 = arith.mulf %116, %116 : vector<18x32xf32>
    %cst_41 = arith.constant dense<0.000000e+00> : vector<18xf32>
    %118 = vector.multi_reduction <add>, %117, %cst_41 [1] : vector<18x32xf32> to vector<18xf32>
    %119 = vector.shape_cast %118 : vector<18xf32> to vector<18x1xf32>
    %cst_42 = arith.constant 3.200000e+01 : f32
    %120 = vector.broadcast %cst_42 : f32 to vector<18x1xf32>
    %121 = arith.divf %119, %120 : vector<18x1xf32>
    %122 = vector.broadcast %114 : vector<18x1xf32> to vector<18x32xf32>
    %123 = arith.subf %110, %122 : vector<18x32xf32>
    %cst_43 = arith.constant 9.99999974E-6 : f32
    %124 = vector.broadcast %cst_43 : f32 to vector<18x1xf32>
    %125 = arith.addf %121, %124 : vector<18x1xf32>
    %126 = math.rsqrt %125 : vector<18x1xf32>
    %127 = vector.broadcast %126 : vector<18x1xf32> to vector<18x32xf32>
    %128 = arith.mulf %123, %127 : vector<18x32xf32>
    %c0_44 = arith.constant 0 : index
    %c0_45 = arith.constant 0 : index
    %129 = vector.load %arg7[%c0_44, %c0_45] : memref<1x32xf32, #tpu.memory_space<vmem>>, vector<1x32xf32>
    %130 = vector.broadcast %129 : vector<1x32xf32> to vector<18x32xf32>
    %131 = arith.mulf %128, %130 : vector<18x32xf32>
    %c0_46 = arith.constant 0 : index
    %c0_47 = arith.constant 0 : index
    %132 = vector.load %arg8[%c0_46, %c0_47] : memref<1x32xf32, #tpu.memory_space<vmem>>, vector<1x32xf32>
    %133 = vector.broadcast %132 : vector<1x32xf32> to vector<18x32xf32>
    %134 = arith.addf %131, %133 : vector<18x32xf32>
    %c0_48 = arith.constant 0 : index
    %c0_49 = arith.constant 0 : index
    %135 = vector.load %arg9[%c0_48, %c0_49] : memref<32x128xf32, #tpu.memory_space<vmem>>, vector<32x128xf32>
    %cst_50 = arith.constant dense<0.000000e+00> : vector<18x128xf32>
    %136 = tpu.matmul %134, %135, %cst_50 {dimension_numbers = #tpu.dot_dimension_numbers<[1], [0], [0], [1], [0, 0, 1, 1], [], []>} : vector<18x32xf32>, vector<32x128xf32>, vector<18x128xf32> -> vector<18x128xf32>
    %c0_51 = arith.constant 0 : index
    %c0_52 = arith.constant 0 : index
    %137 = vector.load %arg10[%c0_51, %c0_52] : memref<1x128xf32, #tpu.memory_space<vmem>>, vector<1x128xf32>
    %138 = vector.broadcast %137 : vector<1x128xf32> to vector<18x128xf32>
    %139 = arith.addf %136, %138 : vector<18x128xf32>
    %cst_53 = arith.constant 5.000000e-01 : f32
    %140 = vector.broadcast %cst_53 : f32 to vector<18x128xf32>
    %141 = arith.mulf %140, %139 : vector<18x128xf32>
    %cst_54 = arith.constant 0.707106769 : f32
    %142 = vector.broadcast %cst_54 : f32 to vector<18x128xf32>
    %143 = arith.mulf %139, %142 : vector<18x128xf32>
    %144 = math.erf %143 : vector<18x128xf32>
    %cst_55 = arith.constant 1.000000e+00 : f32
    %145 = vector.broadcast %cst_55 : f32 to vector<18x128xf32>
    %146 = arith.addf %145, %144 : vector<18x128xf32>
    %147 = arith.mulf %141, %146 : vector<18x128xf32>
    %c0_56 = arith.constant 0 : index
    %c0_57 = arith.constant 0 : index
    %148 = vector.load %arg11[%c0_56, %c0_57] : memref<128x32xf32, #tpu.memory_space<vmem>>, vector<128x32xf32>
    %cst_58 = arith.constant dense<0.000000e+00> : vector<18x32xf32>
    %149 = tpu.matmul %147, %148, %cst_58 {dimension_numbers = #tpu.dot_dimension_numbers<[1], [0], [0], [1], [0, 0, 1, 1], [], []>} : vector<18x128xf32>, vector<128x32xf32>, vector<18x32xf32> -> vector<18x32xf32>
    %c0_59 = arith.constant 0 : index
    %c0_60 = arith.constant 0 : index
    %150 = vector.load %arg12[%c0_59, %c0_60] : memref<1x32xf32, #tpu.memory_space<vmem>>, vector<1x32xf32>
    %151 = vector.broadcast %150 : vector<1x32xf32> to vector<18x32xf32>
    %152 = arith.addf %149, %151 : vector<18x32xf32>
    %c0_61 = arith.constant 0 : index
    %c0_62 = arith.constant 0 : index
    %153 = vector.load %arg13[%c0_61, %c0_62] : memref<32x16xf32, #tpu.memory_space<vmem>>, vector<32x16xf32>
    %cst_63 = arith.constant dense<0.000000e+00> : vector<18x16xf32>
    %154 = tpu.matmul %152, %153, %cst_63 {dimension_numbers = #tpu.dot_dimension_numbers<[1], [0], [0], [1], [0, 0, 1, 1], [], []>} : vector<18x32xf32>, vector<32x16xf32>, vector<18x16xf32> -> vector<18x16xf32>
    %c0_64 = arith.constant 0 : index
    %c0_65 = arith.constant 0 : index
    %155 = vector.load %arg14[%c0_64, %c0_65] : memref<1x16xf32, #tpu.memory_space<vmem>>, vector<1x16xf32>
    %156 = vector.broadcast %155 : vector<1x16xf32> to vector<18x16xf32>
    %157 = arith.addf %154, %156 : vector<18x16xf32>
    %cst_66 = arith.constant 1.702000e+00 : f32
    %158 = vector.broadcast %cst_66 : f32 to vector<18x16xf32>
    %159 = arith.mulf %158, %157 : vector<18x16xf32>
    %160 = arith.negf %159 : vector<18x16xf32>
    %161 = math.exp %160 : vector<18x16xf32>
    %cst_67 = arith.constant 1.000000e+00 : f32
    %162 = vector.broadcast %cst_67 : f32 to vector<18x16xf32>
    %163 = arith.addf %162, %161 : vector<18x16xf32>
    %164 = arith.divf %162, %163 : vector<18x16xf32>
    %165 = arith.mulf %157, %164 : vector<18x16xf32>
    %c0_68 = arith.constant 0 : index
    %c0_69 = arith.constant 0 : index
    %166 = vector.load %arg15[%c0_68, %c0_69] : memref<16x32xf32, #tpu.memory_space<vmem>>, vector<16x32xf32>
    %cst_70 = arith.constant dense<0.000000e+00> : vector<18x32xf32>
    %167 = tpu.matmul %165, %166, %cst_70 {dimension_numbers = #tpu.dot_dimension_numbers<[1], [0], [0], [1], [0, 0, 1, 1], [], []>} : vector<18x16xf32>, vector<16x32xf32>, vector<18x32xf32> -> vector<18x32xf32>
    %c0_71 = arith.constant 0 : index
    %c0_72 = arith.constant 0 : index
    %168 = vector.load %arg16[%c0_71, %c0_72] : memref<1x32xf32, #tpu.memory_space<vmem>>, vector<1x32xf32>
    %169 = vector.broadcast %168 : vector<1x32xf32> to vector<18x32xf32>
    %170 = arith.addf %167, %169 : vector<18x32xf32>
    %171 = arith.addf %110, %152 : vector<18x32xf32>
    %172 = arith.addf %171, %170 : vector<18x32xf32>
    %c0_73 = arith.constant 0 : index
    %c0_74 = arith.constant 0 : index
    %173 = vector.load %arg17[%c0_73, %c0_74] : memref<18x32xf32, #tpu.memory_space<vmem>>, vector<18x32xf32>
    tpu.vector_store %arg17[%c0_73, %c0_74], %172 {strides = array<i32>} : memref<18x32xf32, #tpu.memory_space<vmem>>, vector<18x32xf32>,
    return
  }
}

</mosaic_0001>

<bundles_post_ra>
// kernel: eq.10
= control target key start
LH: loop header
LB: loop body
LE: loop exit
PB: predicated region body
PF: predicated region fallthrough
CT: control target
= control target key end

     0   :  { %vm7_vm0 = vcmask 72704   ;;  %vm13_vm1 = vcmask 146504   ;;  %s39_s0 = inlined_call_operand.vmem [shape: s32[2,9], index: 0, kind: input, shape index: {}]   ;;  %s40_s1 = inlined_call_operand.vmem [shape: s32[18], index: 1, kind: output, shape index: {}]  }
   0x1   :  { %v4_v0 = vld [vmem:[%s39_s0] sm:$0x3]  ;;  %s22_s0 = smov 9  }
   0x2   :  { %5 = vst [vmem:[#allocation1] sm:$0x3] %v4_v0 }
   0x9   :  { %v10_v1 = vld [vmem:[#allocation1 + $0x1] sm:$0x1]   ;;  %v6_v2 = vld [vmem:[#allocation1] sm:$0x1]  }
   0xa   :  { %11 = vrot.lane.b32.xlu0 %v10_v1, %s22_s0  ;;  %8 = vst.msk [vmem:[#allocation0] sm:$0x1] %vm7_vm0, %v6_v2  }
  0x7c   :  { %v12_v3 = vpop.permute.xlu0 %11  }
  0x7d   :  { %14 = vst.msk [vmem:[#allocation0] sm:$0x1] %vm13_vm1, %v12_v3  }
  0x84   :  { %v17_v4 = vld [vmem:[#allocation0] sm:$0x1] }
  0x85   :  { %20 = vst [vmem:[%s40_s1] sm:$0x1] %v17_v4 }

// kernel: custom-call.2
= control target key start
LH: loop header
LB: loop body
LE: loop exit
PB: predicated region body
PF: predicated region fallthrough
CT: control target
= control target key end

     0   :  { %s6_s0 = inlined_call_operand.vmem [shape: u32[16], index: 0, kind: output, shape index: {}]  }

// kernel: block_forward.1
= control target key start
LH: loop header
LB: loop body
LE: loop exit
PB: predicated region body
PF: predicated region fallthrough
CT: control target
= control target key end

     0   :  { %vm62_vm0 = vcmask 261120   ;;  %vm69_vm1 = vcmask 254976   ;;  %v1473_v6 = vmov 32.0   ;;  %s1475_s28 = smov 88   ;;  %s1476_s29 = smov 120   ;;  %vm199_vm12 = vcmask 64512   ;;  %s2083_s0 = inlined_call_operand.vmem [shape: f32[18,32], index: 0, kind: input, shape index: {}]   ;;  %s2084_s2 = inlined_call_operand.vmem [shape: f32[1,32], index: 2, kind: input, shape index: {}]   ;;  %s2085_s3 = inlined_call_operand.vmem [shape: f32[1,32], index: 3, kind: input, shape index: {}]   ;;  %s2086_s4 = inlined_call_operand.vmem [shape: f32[32,96], index: 4, kind: input, shape index: {}]   ;;  %s2087_s1 = inlined_call_operand.vmem [shape: f32[18,18], index: 1, kind: input, shape index: {}]   ;;  %s2088_s5 = inlined_call_operand.vmem [shape: f32[32,32], index: 5, kind: input, shape index: {}]   ;;  %s2089_s6 = inlined_call_operand.vmem [shape: f32[1,32], index: 6, kind: input, shape index: {}]   ;;  %s2090_s7 = inlined_call_operand.vmem [shape: f32[1,32], index: 7, kind: input, shape index: {}]   ;;  %s2091_s8 = inlined_call_operand.vmem [shape: f32[1,32], index: 8, kind: input, shape index: {}]   ;;  %s2092_s10 = inlined_call_operand.vmem [shape: f32[1,128], index: 10, kind: input, shape index: {}]   ;;  %s2093_s9 = inlined_call_operand.vmem [shape: f32[32,128], index: 9, kind: input, shape index: {}]   ;;  %s2094_s12 = inlined_call_operand.vmem [shape: f32[1,32], index: 12, kind: input, shape index: {}]   ;;  %s2095_s11 = inlined_call_operand.vmem [shape: f32[128,32], index: 11, kind: input, shape index: {}]   ;;  %s2096_s13 = inlined_call_operand.vmem [shape: f32[32,16], index: 13, kind: input, shape index: {}]   ;;  %s2097_s14 = inlined_call_operand.vmem [shape: f32[1,16], index: 14, kind: input, shape index: {}]   ;;  %s2098_s16 = inlined_call_operand.vmem [shape: f32[1,32], index: 16, kind: input, shape index: {}]   ;;  %s2099_s15 = inlined_call_operand.vmem [shape: f32[16,32], index: 15, kind: input, shape index: {}]   ;;  %s2100_s17 = inlined_call_operand.vmem [shape: f32[18,32], index: 17, kind: output, shape index: {}]  }
   0x1   :  { %2102 = sst [smem:[#allocation2_spill]] %s2083_s0  ;;  %1393 = vrcp.f32 %v1473_v6  ;;  %v154_v28 = vld [vmem:[%s2086_s4 + $0x18] sm:$0xff]  ;;  %v153_v29 = vld [vmem:[%s2086_s4 + $0x10] sm:$0xff]  ;;  %v152_v30 = vld [vmem:[%s2086_s4 + $0x8] sm:$0xff]  ;;  %s1477_s0 = smov 72   ;;  %vm296_vm13 = vcmask 1041408  }
   0x2   :  { %2103 = sst [smem:[#allocation3_spill]] %s2084_s2  ;;  %176 = vmatpush.msra.mxu0 %v154_v28  ;;  %1345 = vmatpush.msra.mxu1 %v154_v28  ;;  %v151_v31 = vld [vmem:[%s2086_s4] sm:$0xff]  ;;  %s1478_s30 = smov 80   ;;  %vm244_vm14 = vcmask 146432   ;;  %vm251_vm15 = vcmask 140288  }
   0x3   :  { %s2104_s26 = sld [smem:[#allocation2_spill]]  ;;  %v1385_v53 = vld [vmem:[%s2085_s3] ss:$0 sm:$0xff]  ;;  %s1474_s3 = smov 96  }
   0x4   :  { %177 = vmatpush.msra.mxu0 %v153_v29  ;;  %1346 = vmatpush.msra.mxu1 %v153_v29  ;;  %s2105_s25 = sld [smem:[#allocation3_spill]]  ;;  %s1479_s18 = smov 104  }
   0x5   :  { %s1480_s19 = smov 112   ;;  %s1481_s2 = smov 64  }
   0x6   :  { %178 = vmatpush.msra.mxu0 %v152_v30  ;;  %1347 = vmatpush.msra.mxu1 %v152_v30  ;;  %s1485_s27 = smov 8  }
   0x7   :  { %v1394_v7 = vpop.eup %1393 }
   0x8   :  { %v74_v8 = vmul.f32 32.0, %v1394_v7  ;;  %vm78_vm2 = vweird.f32 %v1394_v7  ;;  %179 = vmatpush.msra.mxu0 %v151_v31  ;;  %1348 = vmatpush.msra.mxu1 %v151_v31 }
   0x9   :  { %v1581_v0 = vld [vmem:[%s2104_s26] sm:$0xff]  ;;  %v1586_v1 = vld [vmem:[%s2104_s26 + $0x8] sm:$0xff]  ;;  %v1595_v4 = vld [vmem:[%s2104_s26 + $0x10] sm:$0x3]  ;;  %s1484_s26 = smov 48  }
   0xa   :  { %v63_v2 = vsel %vm62_vm0, %v1581_v0, 0.0  ;;  %v66_v3 = vsel %vm62_vm0, %v1586_v1, 0.0  ;;  %v70_v5 = vsel %vm69_vm1, %v1595_v4, 0.0  ;;  %v75_v9 = vsub.f32 1.0, %v74_v8  ;;  %v1384_v49 = vld [vmem:[%s2105_s25] ss:$0 sm:$0xff] }
   0xb   :  { %64 = vadd.xlane.f32.xlu0 %v63_v2  ;;  %67 = vadd.xlane.f32.xlu1 %v66_v3  ;;  %s1483_s25 = smov 56  }
   0xc   :  { %v76_v10 = vmul.f32 %v1394_v7, %v75_v9 }
   0xe   :  { %v77_v11 = vadd.f32 %v1394_v7, %v76_v10 }
  0x10   :  { %v1599_v12 = vsel %vm78_vm2, %v1394_v7, %v77_v11  ;;  %vm766_vm2 = vcmask 130048  }
  0x13   :  { %71 = vadd.xlane.f32.xlu0 %v70_v5 }
  0x7e   :  { %v65_v13 = vpop.xlane.xlu0 %64  ;;  %v68_v17 = vpop.xlane.xlu1 %67 }
  0x7f   :  { %v80_v14 = vmul.f32 %v1599_v12, %v65_v13  ;;  %v81_v21 = vmul.f32 %v1599_v12, %v68_v17 }
  0x81   :  { %v83_v15 = vsub.f32 %v1581_v0, %v80_v14  ;;  %v1610_v23 = vsub.f32 %v1586_v1, %v81_v21 }
  0x83   :  { %v86_v16 = vmul.f32 %v83_v15, %v83_v15  ;;  %v87_v26 = vmul.f32 %v1610_v23, %v1610_v23 }
  0x85   :  { %v89_v18 = vsel %vm62_vm0, %v86_v16, 0.0  ;;  %v92_v27 = vsel %vm62_vm0, %v87_v26, 0.0 }
  0x86   :  { %90 = vadd.xlane.f32.xlu1 %v89_v18  ;;  %v72_v19 = vpop.xlane.xlu0 %71 }
  0x87   :  { %v82_v20 = vmul.f32 %v1599_v12, %v72_v19 }
  0x89   :  { %v1607_v22 = vsub.f32 %v1595_v4, %v82_v20 }
  0x8b   :  { %v88_v24 = vmul.f32 %v1607_v22, %v1607_v22 }
  0x8d   :  { %v95_v25 = vsel %vm69_vm1, %v88_v24, 0.0 }
  0x8e   :  { %96 = vadd.xlane.f32.xlu2 %v95_v25 }
  0x96   :  { %93 = vadd.xlane.f32.xlu2 %v92_v27 }
  0xf9   :  { %v91_v32 = vpop.xlane.xlu1 %90 }
  0xfa   :  { %v98_v33 = vmul.f32 %v91_v32, %v1599_v12 }
  0xfc   :  { %v101_v34 = vadd.f32 1e-05, %v98_v33 }
  0xfe   :  { %1395 = vrsqrt.f32 %v101_v34  ;;  %vm110_vm4 = vweird.f32 %v101_v34 }
 0x101   :  { %v97_v35 = vpop.xlane.xlu2 %96 }
 0x102   :  { %v100_v36 = vmul.f32 %v97_v35, %v1599_v12 }
 0x104   :  { %v1396_v37 = vpop.eup %1395  ;;  %v103_v38 = vadd.f32 1e-05, %v100_v36 }
 0x105   :  { %v105_v39 = vmul.f32 %v1396_v37, %v101_v34  ;;  %vm111_vm3 = vweird.f32 %v1396_v37 }
 0x106   :  { %1397 = vrsqrt.f32 %v103_v38  ;;  %vm112_vm5 = vmor %vm110_vm4, %vm111_vm3  ;;  %vm130_vm7 = vweird.f32 %v103_v38  ;;  %vm770_vm3 = vcmask 195584  }
 0x107   :  { %v106_v40 = vmul.f32 %v1396_v37, %v105_v39  ;;  %v59_v39 = vld [vmem:[%s2087_s1] sm:$0xff] }
 0x109   :  { %v107_v41 = vmul.f32 0.5, %v106_v40  ;;  %v94_v42 = vpop.xlane.xlu2 %93 }
 0x10a   :  { %v99_v43 = vmul.f32 %v94_v42, %v1599_v12 }
 0x10b   :  { %v108_v44 = vsub.f32 1.5, %v107_v41 }
 0x10c   :  { %v1398_v45 = vpop.eup %1397  ;;  %v102_v46 = vadd.f32 1e-05, %v99_v43 }
 0x10d   :  { %v109_v47 = vmul.f32 %v1396_v37, %v108_v44  ;;  %v125_v48 = vmul.f32 %v1398_v45, %v103_v38  ;;  %vm131_vm6 = vweird.f32 %v1398_v45  ;;  %v60_v44 = vld [vmem:[%s2087_s1 + $0x8] sm:$0xff] }
 0x10e   :  { %1399 = vrsqrt.f32 %v102_v46  ;;  %vm132_vm8 = vmor %vm130_vm7, %vm131_vm6  ;;  %vm120_vm10 = vweird.f32 %v102_v46 }
 0x10f   :  { %v113_v50 = vsel %vm112_vm5, %v1396_v37, %v109_v47  ;;  %v126_v51 = vmul.f32 %v1398_v45, %v125_v48 }
 0x110   :  { %v134_v52 = vmul.f32 %v113_v50, %v83_v15 }
 0x111   :  { %v127_v54 = vmul.f32 0.5, %v126_v51 }
 0x112   :  { %v141_v55 = vmul.f32 %v1384_v49, %v134_v52 }
 0x113   :  { %v128_v56 = vsub.f32 1.5, %v127_v54 }
 0x114   :  { %v1400_v57 = vpop.eup %1399  ;;  %v148_v58 = vadd.f32 %v1385_v53, %v141_v55 }
 0x115   :  { %v129_v59 = vmul.f32 %v1398_v45, %v128_v56  ;;  %v115_v60 = vmul.f32 %v1400_v57, %v102_v46  ;;  %vm121_vm9 = vweird.f32 %v1400_v57 }
 0x116   :  { %1284 = vmatmul.msk.f32.vlgmr.msra.gmra.mxu0 %vm62_vm0, %v148_v58  ;;  %vm122_vm11 = vmor %vm120_vm10, %vm121_vm9 }
 0x117   :  { %v133_v61 = vsel %vm132_vm8, %v1398_v45, %v129_v59  ;;  %v116_v62 = vmul.f32 %v1400_v57, %v115_v60 }
 0x118   :  { %v136_v63 = vmul.f32 %v133_v61, %v1607_v22 }
 0x119   :  { %v117_v2 = vmul.f32 0.5, %v116_v62  ;;  %v61_v62 = vld [vmem:[%s2087_s1 + $0x10] sm:$0x3]  ;;  %s1482_s1 = smov 40  }
 0x11a   :  { %v143_v3 = vmul.f32 %v1384_v49, %v136_v63 }
 0x11b   :  { %v118_v5 = vsub.f32 1.5, %v117_v2 }
 0x11c   :  { %v150_v6 = vadd.f32 %v1385_v53, %v143_v3 }
 0x11d   :  { %v119_v7 = vmul.f32 %v1400_v57, %v118_v5 }
 0x11e   :  { %1286 = vmatmul.msk.f32.vlgmr.msra.gmra.mxu1 %vm62_vm0, %v150_v6 }
 0x11f   :  { %v123_v8 = vsel %vm122_vm11, %v1400_v57, %v119_v7 }
 0x120   :  { %v135_v9 = vmul.f32 %v123_v8, %v1610_v23 }
 0x122   :  { %v142_v10 = vmul.f32 %v1384_v49, %v135_v9 }
 0x124   :  { %v149_v11 = vadd.f32 %v1385_v53, %v142_v10 }
 0x126   :  { %1285 = vmatmul.msk.f32.gmra.mxu0 %vm62_vm0, %v149_v11 }
 0x193   :  { %v1644_v13 = vpop.f32.mrf.mxu0 }
 0x194   :  { %193 = vrot.lane.b32.xlu2 %v1644_v13, %s1474_s3 }
 0x19b   :  { %v1647_v14 = vpop.f32.mrf.mxu1 }
 0x19c   :  { %197 = vrot.lane.b32.xlu0 %v1647_v14, %s1474_s3 }
 0x1a3   :  { %v1650_v15 = vpop.f32.mrf.mxu0 }
 0x1a4   :  { %335 = vrot.lane.b32.xlu0 %v1647_v14, %s1475_s28  ;;  %333 = vrot.lane.b32.xlu2 %v1650_v15, %s1475_s28  ;;  %v1740_v8 = vpack.i.bf16 %v1644_v13, %v1650_v15 }
 0x1a5   :  { %195 = vrot.lane.b32.xlu1 %v1650_v15, %s1474_s3  ;;  %s1486_s3 = smov 16  }
 0x1ac   :  { %325 = vrot.lane.b32.xlu0 %v1644_v13, %s1476_s29  ;;  %327 = vrot.lane.b32.xlu2 %v1650_v15, %s1476_s29 }
 0x1ad   :  { %331 = vrot.lane.b32.xlu1 %v1644_v13, %s1475_s28  ;;  %s1487_s28 = smov 24  }
 0x1b4   :  { %329 = vrot.lane.b32.xlu0 %v1647_v14, %s1476_s29  ;;  %601 = vrot.lane.b32.xlu2 %v1650_v15, %s1477_s0 }
 0x1b5   :  { %603 = vrot.lane.b32.xlu1 %v1647_v14, %s1477_s0 }
 0x1bc   :  { %469 = vrot.lane.b32.xlu0 %v1647_v14, %s1478_s30  ;;  %593 = vrot.lane.b32.xlu2 %v1644_v13, %s1479_s18 }
 0x1bd   :  { %599 = vrot.lane.b32.xlu1 %v1644_v13, %s1477_s0 }
 0x1c4   :  { %465 = vrot.lane.b32.xlu0 %v1644_v13, %s1478_s30  ;;  %595 = vrot.lane.b32.xlu2 %v1650_v15, %s1479_s18 }
 0x1c5   :  { %467 = vrot.lane.b32.xlu1 %v1650_v15, %s1478_s30 }
 0x1cc   :  { %597 = vrot.lane.b32.xlu0 %v1647_v14, %s1479_s18  ;;  %461 = vrot.lane.b32.xlu2 %v1650_v15, %s1480_s19 }
 0x1cd   :  { %459 = vrot.lane.b32.xlu1 %v1644_v13, %s1480_s19 }
 0x1d4   :  { %283 = vrot.lane.b32.xlu2 %v1647_v14, %s1481_s2 }
 0x1d5   :  { %463 = vrot.lane.b32.xlu1 %v1647_v14, %s1480_s19 }
 0x1ee   :  { %v194_v16 = vpop.permute.xlu2 %193 }
 0x1fe   :  { %v334_v17 = vpop.permute.xlu2 %333 }
 0x206   :  { %v328_v18 = vpop.permute.xlu2 %327 }
 0x20e   :  { %v198_v19 = vpop.permute.xlu0 %197  ;;  %v602_v20 = vpop.permute.xlu2 %601 }
 0x20f   :  { %1287 = vmatpush.xpose.msk.msrb.mxu1 %vm199_vm12, %v198_v19 }
 0x216   :  { %v336_v21 = vpop.permute.xlu0 %335  ;;  %v594_v22 = vpop.permute.xlu2 %593 }
 0x217   :  { %v196_v23 = vpop.permute.xlu1 %195  ;;  %1297 = vmatpush.xpose.msk.msra.mxu3 %vm199_vm12, %v336_v21 }
 0x218   :  { %1288 = vmatpush.xpose.msk.msrb.mxu1 %vm199_vm12, %v196_v23 }
 0x21b   :  { %1298 = vmatpush.xpose.msk.msra.mxu3 %vm199_vm12, %v334_v17 }
 0x21c   :  { %1289 = vmatpush.xpose.msk.msrb.mxu1 %vm199_vm12, %v194_v16 }
 0x21e   :  { %v326_v24 = vpop.permute.xlu0 %325  ;;  %v596_v25 = vpop.permute.xlu2 %595 }
 0x21f   :  { %v332_v26 = vpop.permute.xlu1 %331  ;;  %1290 = vmatmul.msk.f32.vlgmr.msrb.gmra.mxu1 %vm199_vm12, %v1644_v13 }
 0x220   :  { %1299 = vmatpush.xpose.msk.msra.mxu3 %vm199_vm12, %v332_v26 }
 0x223   :  { %1300 = vmatmul.msk.f32.vlgmr.msra.gmra.mxu3 %vm199_vm12, %v326_v24 }
 0x226   :  { %v330_v27 = vpop.permute.xlu0 %329  ;;  %v462_v28 = vpop.permute.xlu2 %461 }
 0x227   :  { %v604_v29 = vpop.permute.xlu1 %603  ;;  %1291 = vmatmul.msk.f32.gmra.mxu1 %vm199_vm12, %v1650_v15 }
 0x228   :  { %1317 = vmatpush.xpose.msk.msrb.mxu3 %vm199_vm12, %v604_v29 }
 0x22b   :  { %1301 = vmatmul.msk.f32.gmra.mxu3 %vm199_vm12, %v328_v18 }
 0x22c   :  { %1318 = vmatpush.xpose.msk.msrb.mxu3 %vm199_vm12, %v602_v20 }
 0x22e   :  { %v470_v30 = vpop.permute.xlu0 %469  ;;  %v284_v31 = vpop.permute.xlu2 %283 }
 0x22f   :  { %v600_v32 = vpop.permute.xlu1 %599  ;;  %1292 = vmatmul.msk.f32.gmra.mxu1 %vm199_vm12, %v1647_v14  ;;  %1293 = vmatpush.msk.msra.mxu2 %vm296_vm13, %v284_v31 }
 0x230   :  { %1307 = vmatpush.xpose.msk.msrb.mxu0 %vm199_vm12, %v470_v30  ;;  %1319 = vmatpush.xpose.msk.msrb.mxu3 %vm199_vm12, %v600_v32 }
 0x233   :  { %1302 = vmatmul.msk.f32.gmra.mxu3 %vm199_vm12, %v330_v27 }
 0x236   :  { %v466_v34 = vpop.permute.xlu0 %465 }
 0x237   :  { %v468_v33 = vpop.permute.xlu1 %467 }
 0x238   :  { %1308 = vmatpush.xpose.msk.msrb.mxu0 %vm199_vm12, %v468_v33 }
 0x23b   :  { %1320 = vmatmul.msk.f32.vlgmr.msrb.gmra.mxu3 %vm199_vm12, %v594_v22 }
 0x23c   :  { %1309 = vmatpush.xpose.msk.msrb.mxu0 %vm199_vm12, %v466_v34 }
 0x23e   :  { %v598_v36 = vpop.permute.xlu0 %597 }
 0x23f   :  { %v460_v35 = vpop.permute.xlu1 %459 }
 0x240   :  { %1310 = vmatmul.msk.f32.vlgmr.msrb.gmra.mxu0 %vm199_vm12, %v460_v35 }
 0x243   :  { %1321 = vmatmul.msk.f32.gmra.mxu3 %vm199_vm12, %v596_v25 }
 0x247   :  { %v464_v37 = vpop.permute.xlu1 %463 }
 0x248   :  { %1311 = vmatmul.msk.f32.gmra.mxu0 %vm199_vm12, %v462_v28 }
 0x24b   :  { %1322 = vmatmul.msk.f32.gmra.mxu3 %vm199_vm12, %v598_v36 }
 0x250   :  { %1312 = vmatmul.msk.f32.gmra.mxu0 %vm199_vm12, %v464_v37 }
 0x29c   :  { %v229_v38 = vpop.f32.mrf.mxu1 }
 0x29d   :  { %v238_v40 = vmul.f32 0.35355338, %v229_v38 }
 0x29f   :  { %v1704_v41 = vadd.f32 %v238_v40, %v59_v39 }
 0x2a1   :  { %v245_v42 = vsel %vm244_vm14, %v1704_v41, -inf }
 0x2a2   :  { %246 = vmax.xlane.f32.xlu0 %v245_v42 }
 0x2a4   :  { %v232_v43 = vpop.f32.mrf.mxu1 }
 0x2a5   :  { %v239_v45 = vmul.f32 0.35355338, %v232_v43 }
 0x2a6   :  { %v366_v46 = vpop.f32.mrf.mxu3 }
 0x2a7   :  { %v375_v47 = vmul.f32 0.35355338, %v366_v46  ;;  %v1711_v48 = vadd.f32 %v239_v45, %v60_v44 }
 0x2a9   :  { %v248_v49 = vsel %vm244_vm14, %v1711_v48, -inf  ;;  %v1715_v50 = vadd.f32 %v375_v47, %v59_v39 }
 0x2aa   :  { %249 = vmax.xlane.f32.xlu2 %v248_v49 }
 0x2ab   :  { %v381_v51 = vsel %vm244_vm14, %v1715_v50, -inf }
 0x2ac   :  { %382 = vmax.xlane.f32.xlu0 %v381_v51  ;;  %v235_v58 = vpop.f32.mrf.mxu1 }
 0x2ad   :  { %v240_v60 = vmul.f32 0.35355338, %v235_v58 }
 0x2ae   :  { %v369_v52 = vpop.f32.mrf.mxu3 }
 0x2af   :  { %v376_v53 = vmul.f32 0.35355338, %v369_v52  ;;  %v1730_v3 = vadd.f32 %v240_v60, %v61_v62 }
 0x2b1   :  { %v1719_v54 = vadd.f32 %v376_v53, %v60_v44  ;;  %v252_v6 = vsel %vm251_vm15, %v1730_v3, -inf }
 0x2b3   :  { %v384_v55 = vsel %vm244_vm14, %v1719_v54, -inf }
 0x2b4   :  { %385 = vmax.xlane.f32.xlu2 %v384_v55 }
 0x2b6   :  { %v372_v9 = vpop.f32.mrf.mxu3 }
 0x2b7   :  { %v377_v19 = vmul.f32 0.35355338, %v372_v9 }
 0x2b9   :  { %v1756_v23 = vadd.f32 %v377_v19, %v61_v62 }
 0x2bb   :  { %v387_v27 = vsel %vm251_vm15, %v1756_v23, -inf }
 0x2bd   :  { %v500_v56 = vpop.f32.mrf.mxu0 }
 0x2be   :  { %v509_v57 = vmul.f32 0.35355338, %v500_v56  ;;  %v634_v10 = vpop.f32.mrf.mxu3 }
 0x2bf   :  { %v643_v13 = vmul.f32 0.35355338, %v634_v10 }
 0x2c0   :  { %v1723_v59 = vadd.f32 %v509_v57, %v59_v39 }
 0x2c1   :  { %v1750_v18 = vadd.f32 %v643_v13, %v59_v39 }
 0x2c2   :  { %v515_v61 = vsel %vm244_vm14, %v1723_v59, -inf }
 0x2c3   :  { %516 = vmax.xlane.f32.xlu1 %v515_v61  ;;  %v649_v22 = vsel %vm244_vm14, %v1750_v18, -inf }
 0x2c5   :  { %v503_v63 = vpop.f32.mrf.mxu0 }
 0x2c6   :  { %v510_v2 = vmul.f32 0.35355338, %v503_v63  ;;  %v637_v17 = vpop.f32.mrf.mxu3 }
 0x2c7   :  { %v644_v21 = vmul.f32 0.35355338, %v637_v17 }
 0x2c8   :  { %v1732_v5 = vadd.f32 %v510_v2, %v60_v44 }
 0x2c9   :  { %v1758_v24 = vadd.f32 %v644_v21, %v60_v44 }
 0x2ca   :  { %v518_v7 = vsel %vm244_vm14, %v1732_v5, -inf }
 0x2cb   :  { %253 = vmax.xlane.f32.xlu1 %v252_v6  ;;  %519 = vmax.xlane.f32.xlu0 %v518_v7  ;;  %v652_v31 = vsel %vm244_vm14, %v1758_v24, -inf }
 0x2cc   :  { %1375 = vrot.lane.b32.xlu2 %v1740_v8, %s1482_s1 }
 0x2cd   :  { %v506_v11 = vpop.f32.mrf.mxu0 }
 0x2ce   :  { %v511_v16 = vmul.f32 0.35355338, %v506_v11  ;;  %v640_v25 = vpop.f32.mrf.mxu3 }
 0x2cf   :  { %v645_v29 = vmul.f32 0.35355338, %v640_v25 }
 0x2d0   :  { %v1748_v15 = vadd.f32 %v511_v16, %v61_v62 }
 0x2d1   :  { %v1765_v32 = vadd.f32 %v645_v29, %v61_v62 }
 0x2d2   :  { %v521_v20 = vsel %vm251_vm15, %v1748_v15, -inf }
 0x2d3   :  { %v655_v37 = vsel %vm251_vm15, %v1765_v32, -inf }
 0x2df   :  { %418 = vrot.lane.b32.xlu0 %v1647_v14, %s1483_s25 }
 0x2e4   :  { %1365 = vrot.lane.b32.xlu1 %v1740_v8, %s1481_s2 }
 0x2e7   :  { %1370 = vrot.lane.b32.xlu0 %v1740_v8, %s1483_s25 }
 0x30e   :  { %522 = vmax.xlane.f32.xlu1 %v521_v20 }
 0x311   :  { %650 = vmax.xlane.f32.xlu0 %v649_v22 }
 0x315   :  { %v247_v26 = vpop.xlane.xlu0 %246 }
 0x316   :  { %v255_v28 = vsub.f32 %v1704_v41, %v247_v26  ;;  %388 = vmax.xlane.f32.xlu1 %v387_v27 }
 0x318   :  { %v258_v30 = vmul.f32 1.442695, %v255_v28 }
 0x319   :  { %653 = vmax.xlane.f32.xlu0 %v652_v31 }
 0x31a   :  { %1401 = vpow2.f32 %v258_v30 }
 0x31d   :  { %v250_v33 = vpop.xlane.xlu2 %249 }
 0x31e   :  { %v256_v39 = vsub.f32 %v1711_v48, %v250_v33 }
 0x31f   :  { %v383_v34 = vpop.xlane.xlu0 %382 }
 0x320   :  { %v1767_v35 = vpop.eup %1401  ;;  %v390_v36 = vsub.f32 %v1715_v50, %v383_v34  ;;  %v260_v41 = vmul.f32 1.442695, %v256_v39 }
 0x321   :  { %656 = vmax.xlane.f32.xlu0 %v655_v37  ;;  %v264_v38 = vsel %vm244_vm14, %v1767_v35, 0.0 }
 0x322   :  { %v393_v40 = vmul.f32 1.442695, %v390_v36  ;;  %265 = vadd.xlane.f32.xlu2 %v264_v38 }
 0x324   :  { %1403 = vpow2.f32 %v393_v40 }
 0x325   :  { %1405 = vpow2.f32 %v260_v41 }
 0x327   :  { %v386_v42 = vpop.xlane.xlu2 %385 }
 0x328   :  { %v391_v44 = vsub.f32 %v1719_v54, %v386_v42 }
 0x32a   :  { %v1775_v43 = vpop.eup %1403  ;;  %v395_v46 = vmul.f32 1.442695, %v391_v44 }
 0x32b   :  { %v399_v45 = vsel %vm244_vm14, %v1775_v43, 0.0  ;;  %v1782_v47 = vpop.eup %1405 }
 0x32c   :  { %400 = vadd.xlane.f32.xlu0 %v399_v45  ;;  %1407 = vpow2.f32 %v395_v46  ;;  %v267_v48 = vsel %vm244_vm14, %v1782_v47, 0.0 }
 0x32f   :  { %686 = vrot.lane.b32.xlu1 %v1647_v14, %s1482_s1  ;;  %v1376_v21 = vpop.permute.xlu2 %1375 }
 0x330   :  { %v1377_v44 = vunpack.i.l.bf16 %v1376_v21  ;;  %v1378_v45 = vunpack.i.h.bf16 %v1376_v21 }
 0x332   :  { %v1787_v51 = vpop.eup %1407 }
 0x333   :  { %v402_v53 = vsel %vm244_vm14, %v1787_v51, 0.0 }
 0x334   :  { %268 = vadd.xlane.f32.xlu0 %v267_v48 }
 0x336   :  { %v517_v49 = vpop.xlane.xlu1 %516 }
 0x337   :  { %v524_v50 = vsub.f32 %v1723_v59, %v517_v49 }
 0x339   :  { %v527_v52 = vmul.f32 1.442695, %v524_v50 }
 0x33b   :  { %1409 = vpow2.f32 %v527_v52 }
 0x33c   :  { %403 = vadd.xlane.f32.xlu0 %v402_v53 }
 0x33e   :  { %v254_v54 = vpop.xlane.xlu1 %253  ;;  %v1798_v60 = vpop.xlane.xlu0 %519 }
 0x33f   :  { %v257_v55 = vsub.f32 %v1730_v3, %v254_v54  ;;  %v525_v52 = vsub.f32 %v1732_v5, %v1798_v60 }
 0x341   :  { %v1792_v56 = vpop.eup %1409  ;;  %v262_v57 = vmul.f32 1.442695, %v257_v55  ;;  %v529_v55 = vmul.f32 1.442695, %v525_v52 }
 0x342   :  { %v533_v58 = vsel %vm244_vm14, %v1792_v56, 0.0 }
 0x343   :  { %1411 = vpow2.f32 %v262_v57  ;;  %534 = vadd.xlane.f32.xlu2 %v533_v58 }
 0x349   :  { %v1796_v59 = vpop.eup %1411 }
 0x34a   :  { %v270_v61 = vsel %vm251_vm15, %v1796_v59, 0.0 }
 0x34b   :  { %271 = vadd.xlane.f32.xlu2 %v270_v61 }
 0x350   :  { %1380 = vrot.lane.b32.xlu0 %v1740_v8, %s1484_s26 }
 0x351   :  { %v419_v62 = vpop.permute.xlu0 %418 }
 0x356   :  { %v1366_v63 = vpop.permute.xlu1 %1365 }
 0x357   :  { %v1367_v2 = vunpack.i.l.bf16 %v1366_v63  ;;  %v1368_v6 = vunpack.i.h.bf16 %v1366_v63 }
 0x359   :  { %v1371_v3 = vpop.permute.xlu0 %1370  ;;  %313 = vmatpush.msra.mxu2 %v1367_v2 }
 0x35a   :  { %v1372_v7 = vunpack.i.l.bf16 %v1371_v3  ;;  %v1373_v9 = vunpack.i.h.bf16 %v1371_v3 }
 0x35b   :  { %314 = vmatpush.msra.mxu2 %v1368_v6 }
 0x35d   :  { %1303 = vmatpush.msk.msrb.mxu2 %vm296_vm13, %v419_v62 }
 0x35f   :  { %447 = vmatpush.msrb.mxu2 %v1372_v7 }
 0x361   :  { %448 = vmatpush.msrb.mxu2 %v1373_v9 }
 0x381   :  { %v523_v10 = vpop.xlane.xlu1 %522 }
 0x382   :  { %v526_v26 = vsub.f32 %v1748_v15, %v523_v10 }
 0x384   :  { %v651_v11 = vpop.xlane.xlu0 %650 }
 0x385   :  { %v658_v16 = vsub.f32 %v1750_v18, %v651_v11  ;;  %v531_v18 = vmul.f32 1.442695, %v526_v26 }
 0x387   :  { %v661_v13 = vmul.f32 1.442695, %v658_v16 }
 0x389   :  { %1413 = vpow2.f32 %v661_v13  ;;  %v389_v8 = vpop.xlane.xlu1 %388 }
 0x38a   :  { %v392_v17 = vsub.f32 %v1756_v23, %v389_v8 }
 0x38c   :  { %v397_v19 = vmul.f32 1.442695, %v392_v17  ;;  %v654_v20 = vpop.xlane.xlu0 %653 }
 0x38d   :  { %v659_v22 = vsub.f32 %v1758_v24, %v654_v20 }
 0x38e   :  { %1415 = vpow2.f32 %v397_v19 }
 0x38f   :  { %v1808_v25 = vpop.eup %1413  ;;  %v663_v27 = vmul.f32 1.442695, %v659_v22 }
 0x390   :  { %v667_v28 = vsel %vm244_vm14, %v1808_v25, 0.0 }
 0x391   :  { %1417 = vpow2.f32 %v663_v27  ;;  %668 = vadd.xlane.f32.xlu1 %v667_v28 }
 0x394   :  { %v1813_v29 = vpop.eup %1415  ;;  %v657_v23 = vpop.xlane.xlu0 %656 }
 0x395   :  { %v660_v30 = vsub.f32 %v1765_v32, %v657_v23  ;;  %v266_v31 = vpop.xlane.xlu2 %265  ;;  %v405_v24 = vsel %vm251_vm15, %v1813_v29, 0.0 }
 0x396   :  { %1419 = vrcp.f32 %v266_v31  ;;  %406 = vadd.xlane.f32.xlu2 %v405_v24 }
 0x397   :  { %v1818_v33 = vpop.eup %1417  ;;  %1421 = vpow2.f32 %v531_v18  ;;  %v665_v15 = vmul.f32 1.442695, %v660_v30 }
 0x398   :  { %v670_v34 = vsel %vm244_vm14, %v1818_v33, 0.0 }
 0x399   :  { %1423 = vpow2.f32 %v665_v15  ;;  %671 = vadd.xlane.f32.xlu1 %v670_v34 }
 0x39c   :  { %v1420_v36 = vpop.eup %1419 }
 0x39d   :  { %v1822_v37 = vpop.eup %1421  ;;  %v276_v32 = vmul.f32 %v1420_v36, %v1767_v35  ;;  %v777_v36 = vld [vmem:[%s2088_s5 + $0x18] sm:$0xff] }
 0x39e   :  { %v539_v40 = vsel %vm251_vm15, %v1822_v37, 0.0  ;;  %799 = vmatpush.msra.mxu0 %v777_v36 }
 0x39f   :  { %v1825_v38 = vpop.eup %1423  ;;  %v401_v39 = vpop.xlane.xlu0 %400  ;;  %1294 = vmatmul.msk.f32.vlgmr.msra.gmra.mxu2 %vm244_vm14, %v276_v32 }
 0x3a0   :  { %v673_v41 = vsel %vm251_vm15, %v1825_v38, 0.0 }
 0x3a1   :  { %540 = vadd.xlane.f32.xlu1 %v539_v40  ;;  %v687_v42 = vpop.permute.xlu1 %686  ;;  %674 = vadd.xlane.f32.xlu0 %v673_v41  ;;  %v774_v40 = vld [vmem:[%s2088_s5] sm:$0xff] }
 0x3a2   :  { %1323 = vmatpush.msk.msra.mxu2 %vm296_vm13, %v687_v42 }
 0x3a4   :  { %715 = vmatpush.msra.mxu2 %v1377_v44 }
 0x3a6   :  { %716 = vmatpush.msra.mxu2 %v1378_v45 }
 0x3a7   :  { %v269_v35 = vpop.xlane.xlu0 %268 }
 0x3a8   :  { %1425 = vrcp.f32 %v269_v35 }
 0x3ae   :  { %v1426_v46 = vpop.eup %1425  ;;  %552 = vrot.lane.b32.xlu2 %v1647_v14, %s1484_s26 }
 0x3af   :  { %v277_v48 = vmul.f32 %v1426_v46, %v1782_v47  ;;  %v404_v57 = vpop.xlane.xlu0 %403 }
 0x3b1   :  { %1295 = vmatmul.msk.f32.gmra.mxu2 %vm244_vm14, %v277_v48 }
 0x3b6   :  { %v535_v49 = vpop.xlane.xlu2 %534 }
 0x3be   :  { %v272_v50 = vpop.xlane.xlu2 %271 }
 0x3bf   :  { %1427 = vrcp.f32 %v272_v50 }
 0x3c0   :  { %1429 = vrcp.f32 %v401_v39 }
 0x3c1   :  { %1431 = vpow2.f32 %v529_v55 }
 0x3c2   :  { %1433 = vrcp.f32 %v404_v57  ;;  %v1381_v63 = vpop.permute.xlu0 %1380 }
 0x3c3   :  { %v1382_v7 = vunpack.i.l.bf16 %v1381_v63 }
 0x3c5   :  { %v1428_v53 = vpop.eup %1427 }
 0x3c6   :  { %v278_v54 = vmul.f32 %v1428_v53, %v1796_v59  ;;  %v1430_v58 = vpop.eup %1429 }
 0x3c7   :  { %v411_v14 = vmul.f32 %v1430_v58, %v1775_v43  ;;  %v1432_v47 = vpop.eup %1431 }
 0x3c8   :  { %1296 = vmatmul.msk.f32.gmra.mxu2 %vm244_vm14, %v278_v54  ;;  %v1434_v61 = vpop.eup %1433  ;;  %v536_v62 = vsel %vm244_vm14, %v1432_v47, 0.0 }
 0x3c9   :  { %v412_v5 = vmul.f32 %v1434_v61, %v1787_v51  ;;  %v1383_v51 = vunpack.i.h.bf16 %v1381_v63 }
 0x3d0   :  { %1304 = vmatmul.msk.f32.vlgmr.msrb.gmra.mxu2 %vm244_vm14, %v411_v14 }
 0x3d7   :  { %537 = vadd.xlane.f32.xlu2 %v536_v62  ;;  %v1386_v62 = vld [vmem:[%s2089_s6] ss:$0 sm:$0xff] }
 0x3d8   :  { %1305 = vmatmul.msk.f32.gmra.mxu2 %vm244_vm14, %v412_v5 }
 0x404   :  { %v669_v60 = vpop.xlane.xlu1 %668 }
 0x409   :  { %v407_v59 = vpop.xlane.xlu2 %406 }
 0x40a   :  { %1435 = vrcp.f32 %v407_v59 }
 0x40b   :  { %1437 = vrcp.f32 %v535_v49 }
 0x40c   :  { %1439 = vrcp.f32 %v669_v60  ;;  %v672_v10 = vpop.xlane.xlu1 %671 }
 0x40d   :  { %1441 = vrcp.f32 %v672_v10 }
 0x410   :  { %v1436_v2 = vpop.eup %1435 }
 0x411   :  { %v553_v3 = vpop.permute.xlu2 %552  ;;  %v413_v43 = vmul.f32 %v1436_v2, %v1813_v29  ;;  %v1438_v6 = vpop.eup %1437 }
 0x412   :  { %1313 = vmatpush.msk.msra.mxu1 %vm296_vm13, %v553_v3  ;;  %v545_v9 = vmul.f32 %v1438_v6, %v1792_v56  ;;  %v1440_v11 = vpop.eup %1439 }
 0x413   :  { %1306 = vmatmul.msk.f32.gmra.mxu2 %vm244_vm14, %v413_v43  ;;  %v679_v16 = vmul.f32 %v1440_v11, %v1808_v25  ;;  %v1442_v8 = vpop.eup %1441 }
 0x414   :  { %581 = vmatpush.msra.mxu1 %v1382_v7  ;;  %v675_v13 = vpop.xlane.xlu0 %674  ;;  %v680_v17 = vmul.f32 %v1442_v8, %v1818_v33  ;;  %v541_v25 = vpop.xlane.xlu1 %540 }
 0x415   :  { %1443 = vrcp.f32 %v675_v13 }
 0x416   :  { %582 = vmatpush.msra.mxu1 %v1383_v51 }
 0x417   :  { %1314 = vmatmul.msk.f32.vlgmr.msra.gmra.mxu1 %vm244_vm14, %v545_v9 }
 0x41b   :  { %1324 = vmatmul.msk.f32.vlgmr.msra.gmra.mxu2 %vm244_vm14, %v679_v16  ;;  %v1444_v19 = vpop.eup %1443 }
 0x41c   :  { %v681_v56 = vmul.f32 %v1444_v19, %v1825_v38  ;;  %v775_v38 = vld [vmem:[%s2088_s5 + $0x8] sm:$0xff] }
 0x422   :  { %v316_v20 = vpop.f32.mrf.mxu2 }
 0x423   :  { %1325 = vmatmul.msk.f32.gmra.mxu2 %vm244_vm14, %v680_v17 }
 0x42b   :  { %1326 = vmatmul.msk.f32.gmra.mxu2 %vm244_vm14, %v681_v56 }
 0x434   :  { %v319_v21 = vpop.f32.mrf.mxu2 }
 0x44a   :  { %v538_v22 = vpop.xlane.xlu2 %537 }
 0x44b   :  { %1445 = vrcp.f32 %v538_v22  ;;  %v322_v26 = vpop.f32.mrf.mxu2 }
 0x44c   :  { %1447 = vrcp.f32 %v541_v25 }
 0x451   :  { %v1446_v27 = vpop.eup %1445 }
 0x452   :  { %v546_v28 = vmul.f32 %v1446_v27, %v1432_v47  ;;  %v1448_v29 = vpop.eup %1447  ;;  %v906_v27 = vld [vmem:[%s2093_s9 + $0x18] sm:$0xff] }
 0x453   :  { %v450_v18 = vpop.f32.mrf.mxu2  ;;  %v547_v23 = vmul.f32 %v1448_v29, %v1822_v37  ;;  %v776_v37 = vld [vmem:[%s2088_s5 + $0x10] sm:$0xff]  ;;  %932 = vmatpush.msrb.mxu1 %v906_v27  ;;  %v903_v29 = vld [vmem:[%s2093_s9] sm:$0xff] }
 0x454   :  { %730 = vrot.lane.b32.xlu1 %v450_v18, %s1485_s27  ;;  %1315 = vmatmul.msk.f32.gmra.mxu1 %vm244_vm14, %v546_v28  ;;  %v905_v28 = vld [vmem:[%s2093_s9 + $0x10] sm:$0xff]  ;;  %v904_v18 = vld [vmem:[%s2093_s9 + $0x8] sm:$0xff] }
 0x455   :  { %800 = vmatpush.msra.mxu0 %v776_v37  ;;  %933 = vmatpush.msrb.mxu1 %v905_v28  ;;  %v1084_v28 = vld [vmem:[%s2095_s11 + $0x30] sm:$0xff] }
 0x457   :  { %801 = vmatpush.msra.mxu0 %v775_v38  ;;  %934 = vmatpush.msrb.mxu1 %v904_v18 }
 0x459   :  { %802 = vmatpush.msra.mxu0 %v774_v40  ;;  %935 = vmatpush.msrb.mxu1 %v903_v29  ;;  %v1388_v40 = vld [vmem:[%s2091_s8] ss:$0 sm:$0xff] }
 0x45b   :  { %v453_v30 = vpop.f32.mrf.mxu2 }
 0x45c   :  { %732 = vrot.lane.b32.xlu1 %v453_v30, %s1485_s27  ;;  %1316 = vmatmul.msk.f32.gmra.mxu1 %vm244_vm14, %v547_v23 }
 0x494   :  { %v584_v31 = vpop.f32.mrf.mxu1 }
 0x495   :  { %742 = vrot.lane.b32.xlu2 %v584_v31, %s1486_s3 }
 0x496   :  { %v456_v24 = vpop.f32.mrf.mxu2 }
 0x49e   :  { %v718_v33 = vpop.f32.mrf.mxu2 }
 0x49f   :  { %754 = vrot.lane.b32.xlu0 %v718_v33, %s1487_s28 }
 0x4a6   :  { %v721_v15 = vpop.f32.mrf.mxu2 }
 0x4a7   :  { %756 = vrot.lane.b32.xlu1 %v721_v15, %s1487_s28 }
 0x4ae   :  { %v724_v34 = vpop.f32.mrf.mxu2 }
 0x4af   :  { %758 = vrot.lane.b32.xlu1 %v724_v34, %s1487_s28 }
 0x4c6   :  { %v731_v41 = vpop.permute.xlu1 %730 }
 0x4c7   :  { %v763_v44 = vsel %vm199_vm12, %v316_v20, %v731_v41 }
 0x4ce   :  { %v733_v48 = vpop.permute.xlu1 %732 }
 0x4cf   :  { %v764_v49 = vsel %vm199_vm12, %v319_v21, %v733_v48 }
 0x4d1   :  { %v587_v32 = vpop.f32.mrf.mxu1 }
 0x4d2   :  { %744 = vrot.lane.b32.xlu2 %v587_v32, %s1486_s3  ;;  %v1387_v32 = vld [vmem:[%s2090_s7] ss:$0 sm:$0xff] }
 0x4d9   :  { %v590_v39 = vpop.f32.mrf.mxu1 }
 0x4da   :  { %734 = vrot.lane.b32.xlu2 %v456_v24, %s1485_s27  ;;  %746 = vrot.lane.b32.xlu0 %v590_v39, %s1486_s3 }
 0x4ef   :  { %v743_v42 = vpop.permute.xlu2 %742 }
 0x4f0   :  { %v767_v45 = vsel %vm766_vm2, %v763_v44, %v743_v42 }
 0x511   :  { %v755_v35 = vpop.permute.xlu0 %754 }
 0x512   :  { %v771_v46 = vsel %vm770_vm3, %v767_v45, %v755_v35 }
 0x513   :  { %1327 = vmatmul.msk.f32.vlgmr.msra.gmra.mxu0 %vm62_vm0, %v771_v46 }
 0x519   :  { %v757_v52 = vpop.permute.xlu1 %756 }
 0x521   :  { %v759_v14 = vpop.permute.xlu1 %758 }
 0x52c   :  { %v745_v50 = vpop.permute.xlu2 %744 }
 0x52d   :  { %v768_v53 = vsel %vm766_vm2, %v764_v49, %v745_v50 }
 0x52e   :  { %v772_v54 = vsel %vm770_vm3, %v768_v53, %v757_v52 }
 0x52f   :  { %1328 = vmatmul.msk.f32.gmra.mxu0 %vm62_vm0, %v772_v54 }
 0x534   :  { %v735_v55 = vpop.permute.xlu2 %734 }
 0x535   :  { %v765_v57 = vsel %vm199_vm12, %v322_v26, %v735_v55 }
 0x54c   :  { %v747_v58 = vpop.permute.xlu0 %746 }
 0x54d   :  { %v769_v47 = vsel %vm766_vm2, %v765_v57, %v747_v58 }
 0x54e   :  { %v773_v61 = vsel %vm770_vm3, %v769_v47, %v759_v14 }
 0x54f   :  { %1329 = vmatmul.msk.f32.gmra.mxu0 %vm62_vm0, %v773_v61 }
 0x590   :  { %v804_v5 = vpop.f32.mrf.mxu0 }
 0x591   :  { %v813_v59 = vadd.f32 %v804_v5, %v1581_v0 }
 0x593   :  { %v1888_v60 = vadd.f32 %v1386_v62, %v813_v59 }
 0x595   :  { %v823_v63 = vsel %vm62_vm0, %v1888_v60, 0.0 }
 0x596   :  { %824 = vadd.xlane.f32.xlu2 %v823_v63 }
 0x5ac   :  { %v807_v2 = vpop.f32.mrf.mxu0 }
 0x5ad   :  { %v814_v3 = vadd.f32 %v807_v2, %v1586_v1 }
 0x5af   :  { %v1893_v43 = vadd.f32 %v1386_v62, %v814_v3 }
 0x5b1   :  { %v826_v6 = vsel %vm62_vm0, %v1893_v43, 0.0 }
 0x5b2   :  { %827 = vadd.xlane.f32.xlu0 %v826_v6 }
 0x5cc   :  { %v810_v7 = vpop.f32.mrf.mxu0 }
 0x5cd   :  { %v815_v51 = vadd.f32 %v810_v7, %v1595_v4 }
 0x5cf   :  { %v1898_v9 = vadd.f32 %v1386_v62, %v815_v51 }
 0x5d1   :  { %v829_v0 = vsel %vm69_vm1, %v1898_v9, 0.0 }
 0x5d2   :  { %830 = vadd.xlane.f32.xlu1 %v829_v0 }
 0x609   :  { %v825_v10 = vpop.xlane.xlu2 %824 }
 0x60a   :  { %v832_v11 = vmul.f32 %v825_v10, %v1599_v12  ;;  %v1092_v10 = vld [vmem:[%s2095_s11 + $0x70] sm:$0xff] }
 0x60c   :  { %v835_v1 = vsub.f32 %v1888_v60, %v832_v11  ;;  %v1091_v11 = vld [vmem:[%s2095_s11 + $0x68] sm:$0xff] }
 0x60e   :  { %v838_v16 = vmul.f32 %v835_v1, %v835_v1 }
 0x610   :  { %v841_v13 = vsel %vm62_vm0, %v838_v16, 0.0  ;;  %v1090_v16 = vld [vmem:[%s2095_s11 + $0x60] sm:$0xff] }
 0x611   :  { %842 = vadd.xlane.f32.xlu2 %v841_v13  ;;  %v1089_v13 = vld [vmem:[%s2095_s11 + $0x58] sm:$0xff] }
 0x625   :  { %v828_v8 = vpop.xlane.xlu0 %827 }
 0x626   :  { %v833_v17 = vmul.f32 %v828_v8, %v1599_v12 }
 0x628   :  { %v836_v4 = vsub.f32 %v1893_v43, %v833_v17 }
 0x62a   :  { %v839_v19 = vmul.f32 %v836_v4, %v836_v4 }
 0x62c   :  { %v844_v56 = vsel %vm62_vm0, %v839_v19, 0.0 }
 0x62d   :  { %845 = vadd.xlane.f32.xlu0 %v844_v56  ;;  %v1087_v56 = vld [vmem:[%s2095_s11 + $0x48] sm:$0xff] }
 0x645   :  { %v831_v20 = vpop.xlane.xlu1 %830 }
 0x646   :  { %v834_v21 = vmul.f32 %v831_v20, %v1599_v12 }
 0x648   :  { %v1910_v22 = vsub.f32 %v1898_v9, %v834_v21  ;;  %v1086_v21 = vld [vmem:[%s2095_s11 + $0x40] sm:$0xff] }
 0x64a   :  { %v840_v26 = vmul.f32 %v1910_v22, %v1910_v22 }
 0x64c   :  { %v847_v25 = vsel %vm69_vm1, %v840_v26, 0.0  ;;  %v1085_v26 = vld [vmem:[%s2095_s11 + $0x38] sm:$0xff] }
 0x64d   :  { %848 = vadd.xlane.f32.xlu1 %v847_v25 }
 0x684   :  { %v843_v23 = vpop.xlane.xlu2 %842 }
 0x685   :  { %v850_v30 = vmul.f32 %v843_v23, %v1599_v12  ;;  %v1083_v23 = vld [vmem:[%s2095_s11 + $0x28] sm:$0xff] }
 0x687   :  { %v853_v31 = vadd.f32 1e-05, %v850_v30 }
 0x689   :  { %1449 = vrsqrt.f32 %v853_v31  ;;  %vm862_vm5 = vweird.f32 %v853_v31 }
 0x68f   :  { %v1450_v24 = vpop.eup %1449 }
 0x690   :  { %v857_v33 = vmul.f32 %v1450_v24, %v853_v31  ;;  %vm863_vm4 = vweird.f32 %v1450_v24 }
 0x691   :  { %vm864_vm6 = vmor %vm862_vm5, %vm863_vm4 }
 0x692   :  { %v858_v15 = vmul.f32 %v1450_v24, %v857_v33 }
 0x694   :  { %v859_v34 = vmul.f32 0.5, %v858_v15 }
 0x696   :  { %v860_v36 = vsub.f32 1.5, %v859_v34  ;;  %v1081_v34 = vld [vmem:[%s2095_s11 + $0x18] sm:$0xff] }
 0x698   :  { %v861_v37 = vmul.f32 %v1450_v24, %v860_v36 }
 0x69a   :  { %v865_v38 = vsel %vm864_vm6, %v1450_v24, %v861_v37  ;;  %v1082_v24 = vld [vmem:[%s2095_s11 + $0x20] sm:$0xff]  ;;  %v1080_v37 = vld [vmem:[%s2095_s11 + $0x10] sm:$0xff] }
 0x69b   :  { %v886_v39 = vmul.f32 %v865_v38, %v835_v1  ;;  %v1952_v1 = vld [vmem:[%s2092_s10] ss:$0 sm:$0xff] }
 0x69d   :  { %v893_v41 = vmul.f32 %v1387_v32, %v886_v39  ;;  %v1079_v39 = vld [vmem:[%s2095_s11 + $0x8] sm:$0xff] }
 0x69f   :  { %v900_v42 = vadd.f32 %v1388_v40, %v893_v41  ;;  %v1078_v41 = vld [vmem:[%s2095_s11] sm:$0xff] }
 0x6a0   :  { %v846_v44 = vpop.xlane.xlu0 %845 }
 0x6a1   :  { %v851_v45 = vmul.f32 %v846_v44, %v1599_v12  ;;  %1330 = vmatmul.msk.f32.vlgmr.msrb.gmra.mxu1 %vm62_vm0, %v900_v42 }
 0x6a3   :  { %v854_v35 = vadd.f32 1e-05, %v851_v45 }
 0x6a5   :  { %1451 = vrsqrt.f32 %v854_v35  ;;  %vm872_vm8 = vweird.f32 %v854_v35 }
 0x6ab   :  { %v1452_v46 = vpop.eup %1451 }
 0x6ac   :  { %v867_v48 = vmul.f32 %v1452_v46, %v854_v35  ;;  %vm873_vm7 = vweird.f32 %v1452_v46 }
 0x6ad   :  { %vm874_vm9 = vmor %vm872_vm8, %vm873_vm7 }
 0x6ae   :  { %v868_v49 = vmul.f32 %v1452_v46, %v867_v48 }
 0x6b0   :  { %v869_v50 = vmul.f32 0.5, %v868_v49 }
 0x6b2   :  { %v870_v52 = vsub.f32 1.5, %v869_v50 }
 0x6b4   :  { %v871_v53 = vmul.f32 %v1452_v46, %v870_v52 }
 0x6b6   :  { %v875_v54 = vsel %vm874_vm9, %v1452_v46, %v871_v53 }
 0x6b7   :  { %v887_v55 = vmul.f32 %v875_v54, %v836_v4  ;;  %v1088_v4 = vld [vmem:[%s2095_s11 + $0x50] sm:$0xff] }
 0x6b9   :  { %v894_v57 = vmul.f32 %v1387_v32, %v887_v55 }
 0x6bb   :  { %v901_v58 = vadd.f32 %v1388_v40, %v894_v57 }
 0x6bd   :  { %1331 = vmatmul.msk.f32.gmra.mxu1 %vm62_vm0, %v901_v58 }
 0x6c0   :  { %v849_v14 = vpop.xlane.xlu1 %848 }
 0x6c1   :  { %v852_v47 = vmul.f32 %v849_v14, %v1599_v12  ;;  %v1093_v12 = vld [vmem:[%s2095_s11 + $0x78] sm:$0xff] }
 0x6c2   :  { %1098 = vmatpush.msra.mxu3 %v1093_v12 }
 0x6c3   :  { %v855_v61 = vadd.f32 1e-05, %v852_v47 }
 0x6c4   :  { %1099 = vmatpush.msra.mxu3 %v1092_v10 }
 0x6c5   :  { %1453 = vrsqrt.f32 %v855_v61  ;;  %vm882_vm11 = vweird.f32 %v855_v61 }
 0x6c6   :  { %1100 = vmatpush.msra.mxu3 %v1091_v11 }
 0x6c8   :  { %1101 = vmatpush.msra.mxu3 %v1090_v16 }
 0x6ca   :  { %1102 = vmatpush.msra.mxu3 %v1089_v13 }
 0x6cb   :  { %v1454_v62 = vpop.eup %1453 }
 0x6cc   :  { %v877_v5 = vmul.f32 %v1454_v62, %v855_v61  ;;  %vm883_vm10 = vweird.f32 %v1454_v62  ;;  %1103 = vmatpush.msra.mxu3 %v1088_v4 }
 0x6cd   :  { %vm884_vm12 = vmor %vm882_vm11, %vm883_vm10 }
 0x6ce   :  { %v878_v59 = vmul.f32 %v1454_v62, %v877_v5  ;;  %1104 = vmatpush.msra.mxu3 %v1087_v56 }
 0x6d0   :  { %v879_v63 = vmul.f32 0.5, %v878_v59  ;;  %1105 = vmatpush.msra.mxu3 %v1086_v21 }
 0x6d2   :  { %v880_v2 = vsub.f32 1.5, %v879_v63  ;;  %1106 = vmatpush.msra.mxu3 %v1085_v26 }
 0x6d4   :  { %v881_v3 = vmul.f32 %v1454_v62, %v880_v2  ;;  %1107 = vmatpush.msra.mxu3 %v1084_v28 }
 0x6d6   :  { %v885_v6 = vsel %vm884_vm12, %v1454_v62, %v881_v3  ;;  %1108 = vmatpush.msra.mxu3 %v1083_v23 }
 0x6d7   :  { %v888_v7 = vmul.f32 %v885_v6, %v1910_v22 }
 0x6d8   :  { %1109 = vmatpush.msra.mxu3 %v1082_v24 }
 0x6d9   :  { %v895_v51 = vmul.f32 %v1387_v32, %v888_v7 }
 0x6da   :  { %1110 = vmatpush.msra.mxu3 %v1081_v34 }
 0x6db   :  { %v902_v0 = vadd.f32 %v1388_v40, %v895_v51 }
 0x6dc   :  { %1111 = vmatpush.msra.mxu3 %v1080_v37 }
 0x6dd   :  { %1332 = vmatmul.msk.f32.gmra.mxu1 %vm62_vm0, %v902_v0 }
 0x6de   :  { %1112 = vmatpush.msra.mxu3 %v1079_v39 }
 0x6e0   :  { %1113 = vmatpush.msra.mxu3 %v1078_v41 }
 0x71e   :  { %v937_v8 = vpop.f32.mrf.mxu1 }
 0x71f   :  { %v1961_v17 = vadd.f32 %v1952_v1, %v937_v8 }
 0x721   :  { %v1967_v19 = vmul.f32 0.70710677, %v1961_v17 }
 0x723   :  { %v952_v20 = vmul.f32 %v1967_v19, %v1967_v19 }
 0x725   :  { %v953_v22 = vmin.f32 %v952_v20, 16.0 }
 0x727   :  { %v954_v25 = vmul.f32 2.1237322e-06, %v953_v22  ;;  %v965_v27 = vmul.f32 3.8918573e-05, %v953_v22 }
 0x729   :  { %v955_v18 = vadd.f32 0.00028619796, %v954_v25  ;;  %v966_v29 = vadd.f32 0.001143296, %v965_v27 }
 0x72b   :  { %v956_v30 = vmul.f32 %v955_v18, %v953_v22  ;;  %v967_v31 = vmul.f32 %v966_v29, %v953_v22 }
 0x72d   :  { %v957_v33 = vadd.f32 0.0036580483, %v956_v30  ;;  %v968_v15 = vadd.f32 0.014752088, %v967_v31 }
 0x72f   :  { %v969_v36 = vmul.f32 %v968_v15, %v953_v22  ;;  %v958_v32 = vmul.f32 %v957_v33, %v953_v22 }
 0x731   :  { %v970_v38 = vadd.f32 0.112945676, %v969_v36  ;;  %v959_v42 = vadd.f32 0.05243302, %v958_v32 }
 0x733   :  { %v971_v40 = vmul.f32 %v970_v38, %v953_v22  ;;  %v960_v35 = vmul.f32 %v959_v42, %v953_v22 }
 0x735   :  { %v972_v44 = vadd.f32 0.4994258, %v971_v40  ;;  %v961_v50 = vadd.f32 0.18741608, %v960_v35 }
 0x737   :  { %v973_v45 = vmul.f32 %v972_v44, %v953_v22  ;;  %v962_v55 = vmul.f32 %v961_v50, %v953_v22  ;;  %v946_v22 = vmul.f32 0.5, %v1961_v17 }
 0x739   :  { %v974_v46 = vadd.f32 1.0, %v973_v45  ;;  %v963_v62 = vadd.f32 1.1283791, %v962_v55 }
 0x73a   :  { %v940_v48 = vpop.f32.mrf.mxu1 }
 0x73b   :  { %1455 = vrcp.f32 %v974_v46  ;;  %v2002_v49 = vadd.f32 %v1952_v1, %v940_v48  ;;  %v984_v5 = vand.u32 2147483647, %v974_v46  ;;  %v986_v59 = vand.u32 2147483648, %v974_v46 }
 0x73c   :  { %vm980_vm14 = vweird.f32 %v974_v46  ;;  %v964_v0 = vmul.f32 %v963_v62, %v1967_v19 }
 0x73d   :  { %v2005_v52 = vmul.f32 0.70710677, %v2002_v49  ;;  %v987_v12 = vor.u32 1.1754944e-38, %v986_v59  ;;  %vm985_vm3 = vcmp.eq.f32.partialorder %v984_v5, 8.507059e+37  ;;  %v947_v62 = vmul.f32 0.5, %v2002_v49 }
 0x73f   :  { %v992_v53 = vmul.f32 %v2005_v52, %v2005_v52 }
 0x741   :  { %v1456_v54 = vpop.eup %1455  ;;  %v993_v58 = vmin.f32 %v992_v53, 16.0 }
 0x742   :  { %v976_v57 = vmul.f32 %v1456_v54, %v974_v46  ;;  %vm981_vm13 = vweird.f32 %v1456_v54 }
 0x743   :  { %v994_v47 = vmul.f32 2.1237322e-06, %v993_v58  ;;  %v1005_v61 = vmul.f32 3.8918573e-05, %v993_v58  ;;  %vm982_vm15 = vmor %vm980_vm14, %vm981_vm13 }
 0x744   :  { %v977_v14 = vsub.f32 1.0, %v976_v57 }
 0x745   :  { %v995_v2 = vadd.f32 0.00028619796, %v994_v47  ;;  %v1006_v3 = vadd.f32 0.001143296, %v1005_v61 }
 0x746   :  { %v978_v63 = vmul.f32 %v1456_v54, %v977_v14 }
 0x747   :  { %v996_v7 = vmul.f32 %v995_v2, %v993_v58  ;;  %v1007_v51 = vmul.f32 %v1006_v3, %v993_v58 }
 0x748   :  { %v979_v6 = vadd.f32 %v1456_v54, %v978_v63 }
 0x749   :  { %v997_v11 = vadd.f32 0.0036580483, %v996_v7  ;;  %v1008_v16 = vadd.f32 0.014752088, %v1007_v51 }
 0x74a   :  { %v983_v10 = vsel %vm982_vm15, %v1456_v54, %v979_v6  ;;  %v1126_v6 = vld [vmem:[%s2096_s13 + $0x10] sm:$0xff] }
 0x74b   :  { %v988_v13 = vsel %vm985_vm3, %v987_v12, %v983_v10  ;;  %v1009_v4 = vmul.f32 %v1008_v16, %v993_v58  ;;  %v998_v20 = vmul.f32 %v997_v11, %v993_v58 }
 0x74c   :  { %v989_v8 = vmul.f32 %v988_v13, %v964_v0 }
 0x74d   :  { %v1010_v21 = vadd.f32 0.112945676, %v1009_v4  ;;  %v999_v28 = vadd.f32 0.05243302, %v998_v20 }
 0x74e   :  { %v1333_v56 = vclamps-f32 %v989_v8, 1.0 }
 0x74f   :  { %v1011_v25 = vmul.f32 %v1010_v21, %v993_v58  ;;  %v1000_v29 = vmul.f32 %v999_v28, %v993_v58 }
 0x750   :  { %v1072_v26 = vadd.f32 1.0, %v1333_v56 }
 0x751   :  { %v1012_v18 = vadd.f32 0.4994258, %v1011_v25  ;;  %v1001_v30 = vadd.f32 0.18741608, %v1000_v29 }
 0x752   :  { %v1075_v27 = vmul.f32 %v1072_v26, %v946_v22 }
 0x753   :  { %v1013_v19 = vmul.f32 %v1012_v18, %v993_v58  ;;  %v1002_v17 = vmul.f32 %v1001_v30, %v993_v58 }
 0x754   :  { %1114 = vmatmul.f32.vlgmr.msra.gmra.mxu3 %v1075_v27 }
 0x755   :  { %v1014_v23 = vadd.f32 1.0, %v1013_v19  ;;  %v1003_v38 = vadd.f32 1.1283791, %v1002_v17 }
 0x757   :  { %1457 = vrcp.f32 %v1014_v23  ;;  %v1024_v39 = vand.u32 2147483647, %v1014_v23  ;;  %v1026_v40 = vand.u32 2147483648, %v1014_v23  ;;  %vm1020_vm5 = vweird.f32 %v1014_v23 }
 0x758   :  { %v1004_v46 = vmul.f32 %v1003_v38, %v2005_v52  ;;  %v1127_v52 = vld [vmem:[%s2096_s13 + $0x18] sm:$0xff]  ;;  %v1391_v38 = vld [vmem:[%s2097_s14] ss:$0 sm:$0xff] }
 0x759   :  { %v1027_v48 = vor.u32 1.1754944e-38, %v1026_v40  ;;  %vm1025_vm7 = vcmp.eq.f32.partialorder %v1024_v39, 8.507059e+37  ;;  %1153 = vmatpush.msrb.mxu2 %v1127_v52 }
 0x75a   :  { %v943_v31 = vpop.f32.mrf.mxu1 }
 0x75b   :  { %v2012_v24 = vadd.f32 %v1952_v1, %v943_v31  ;;  %1154 = vmatpush.msrb.mxu2 %v1126_v6  ;;  %v1125_v31 = vld [vmem:[%s2096_s13 + $0x8] sm:$0xff] }
 0x75d   :  { %v2015_v33 = vmul.f32 0.70710677, %v2012_v24  ;;  %v1458_v15 = vpop.eup %1457  ;;  %v948_v29 = vmul.f32 0.5, %v2012_v24  ;;  %1155 = vmatpush.msrb.mxu2 %v1125_v31 }
 0x75e   :  { %v1016_v36 = vmul.f32 %v1458_v15, %v1014_v23  ;;  %vm1021_vm4 = vweird.f32 %v1458_v15 }
 0x75f   :  { %v1032_v34 = vmul.f32 %v2015_v33, %v2015_v33  ;;  %vm1022_vm6 = vmor %vm1020_vm5, %vm1021_vm4 }
 0x760   :  { %v1017_v32 = vsub.f32 1.0, %v1016_v36 }
 0x761   :  { %v1033_v37 = vmin.f32 %v1032_v34, 16.0 }
 0x762   :  { %v1018_v42 = vmul.f32 %v1458_v15, %v1017_v32 }
 0x763   :  { %v1034_v41 = vmul.f32 2.1237322e-06, %v1033_v37  ;;  %v1045_v44 = vmul.f32 3.8918573e-05, %v1033_v37 }
 0x764   :  { %v1019_v45 = vadd.f32 %v1458_v15, %v1018_v42 }
 0x765   :  { %v1035_v1 = vadd.f32 0.00028619796, %v1034_v41  ;;  %v1046_v35 = vadd.f32 0.001143296, %v1045_v44  ;;  %v1231_v41 = vld [vmem:[%s2099_s15 + $0x8] sm:$0xff]  ;;  %v1230_v44 = vld [vmem:[%s2099_s15] sm:$0xff] }
 0x766   :  { %v1023_v53 = vsel %vm1022_vm6, %v1458_v15, %v1019_v45  ;;  %v1124_v15 = vld [vmem:[%s2096_s13] sm:$0xff]  ;;  %1259 = vmatpush.msrb.mxu0 %v1231_v41 }
 0x767   :  { %v1036_v50 = vmul.f32 %v1035_v1, %v1033_v37  ;;  %v1047_v54 = vmul.f32 %v1046_v35, %v1033_v37  ;;  %v1028_v55 = vsel %vm1025_vm7, %v1027_v48, %v1023_v53  ;;  %1156 = vmatpush.msrb.mxu2 %v1124_v15 }
 0x768   :  { %v1029_v57 = vmul.f32 %v1028_v55, %v1004_v46  ;;  %1260 = vmatpush.msrb.mxu0 %v1230_v44 }
 0x769   :  { %v1048_v58 = vadd.f32 0.014752088, %v1047_v54  ;;  %v1037_v14 = vadd.f32 0.0036580483, %v1036_v50 }
 0x76a   :  { %v1334_v47 = vclamps-f32 %v1029_v57, 1.0 }
 0x76b   :  { %v1049_v61 = vmul.f32 %v1048_v58, %v1033_v37  ;;  %v1038_v63 = vmul.f32 %v1037_v14, %v1033_v37 }
 0x76c   :  { %v1073_v5 = vadd.f32 1.0, %v1334_v47 }
 0x76d   :  { %v1050_v59 = vadd.f32 0.112945676, %v1049_v61  ;;  %v1039_v51 = vadd.f32 0.05243302, %v1038_v63 }
 0x76e   :  { %v1076_v2 = vmul.f32 %v1073_v5, %v947_v62 }
 0x76f   :  { %v1051_v3 = vmul.f32 %v1050_v59, %v1033_v37  ;;  %v1040_v12 = vmul.f32 %v1039_v51, %v1033_v37 }
 0x770   :  { %1117 = vmatmul.f32.gmra.mxu3 %v1076_v2 }
 0x771   :  { %v1052_v7 = vadd.f32 0.4994258, %v1051_v3  ;;  %v1041_v10 = vadd.f32 0.18741608, %v1040_v12 }
 0x773   :  { %v1053_v0 = vmul.f32 %v1052_v7, %v1033_v37  ;;  %v1042_v16 = vmul.f32 %v1041_v10, %v1033_v37 }
 0x775   :  { %v1054_v49 = vadd.f32 1.0, %v1053_v0  ;;  %v1043_v56 = vadd.f32 1.1283791, %v1042_v16 }
 0x777   :  { %1459 = vrcp.f32 %v1054_v49  ;;  %v1066_v4 = vand.u32 2147483648, %v1054_v49  ;;  %v1064_v21 = vand.u32 2147483647, %v1054_v49  ;;  %vm1060_vm9 = vweird.f32 %v1054_v49 }
 0x778   :  { %v1044_v25 = vmul.f32 %v1043_v56, %v2015_v33  ;;  %v1390_v33 = vld [vmem:[%s2094_s12] ss:$0 sm:$0xff] }
 0x779   :  { %v1067_v26 = vor.u32 1.1754944e-38, %v1066_v4  ;;  %vm1065_vm11 = vcmp.eq.f32.partialorder %v1064_v21, 8.507059e+37 }
 0x77d   :  { %v1460_v11 = vpop.eup %1459 }
 0x77e   :  { %v1056_v13 = vmul.f32 %v1460_v11, %v1054_v49  ;;  %vm1061_vm8 = vweird.f32 %v1460_v11 }
 0x77f   :  { %vm1062_vm10 = vmor %vm1060_vm9, %vm1061_vm8 }
 0x780   :  { %v1057_v8 = vsub.f32 1.0, %v1056_v13 }
 0x782   :  { %v1058_v20 = vmul.f32 %v1460_v11, %v1057_v8 }
 0x784   :  { %v1059_v22 = vadd.f32 %v1460_v11, %v1058_v20 }
 0x786   :  { %v1063_v27 = vsel %vm1062_vm10, %v1460_v11, %v1059_v22 }
 0x787   :  { %v1068_v28 = vsel %vm1065_vm11, %v1067_v26, %v1063_v27 }
 0x788   :  { %v1069_v18 = vmul.f32 %v1068_v28, %v1044_v25 }
 0x78a   :  { %v1335_v19 = vclamps-f32 %v1069_v18, 1.0 }
 0x78c   :  { %v1074_v23 = vadd.f32 1.0, %v1335_v19 }
 0x78e   :  { %v1077_v30 = vmul.f32 %v1074_v23, %v948_v29 }
 0x790   :  { %1120 = vmatmul.f32.gmra.mxu3 %v1077_v30 }
 0x7d7   :  { %v1115_v17 = vpop.f32.mrf.mxu3 }
 0x7d8   :  { %v2038_v34 = vadd.f32 %v1390_v33, %v1115_v17 }
 0x7da   :  { %1336 = vmatmul.msk.f32.vlgmr.msrb.gmra.mxu2 %vm62_vm0, %v2038_v34 }
 0x7f3   :  { %v1118_v24 = vpop.f32.mrf.mxu3 }
 0x7f4   :  { %v2042_v36 = vadd.f32 %v1390_v33, %v1118_v24  ;;  %v1271_v24 = vadd.f32 %v2038_v34, %v1888_v60 }
 0x7f6   :  { %1337 = vmatmul.msk.f32.gmra.mxu2 %vm62_vm0, %v2042_v36 }
 0x813   :  { %v1121_v37 = vpop.f32.mrf.mxu3 }
 0x814   :  { %v2046_v32 = vadd.f32 %v1390_v33, %v1121_v37  ;;  %v1392_v33 = vld [vmem:[%s2098_s16] ss:$0 sm:$0xff] }
 0x816   :  { %1338 = vmatmul.msk.f32.gmra.mxu2 %vm62_vm0, %v2046_v32  ;;  %v1273_v60 = vadd.f32 %v2046_v32, %v1898_v9 }
 0x85d   :  { %v1158_v39 = vpop.f32.mrf.mxu2 }
 0x85e   :  { %v1159_v40 = vadd.f32 %v1391_v38, %v1158_v39 }
 0x860   :  { %v1339_v42 = vmul.f32 -1.702, %v1159_v40 }
 0x862   :  { %v1173_v1 = vmul.f32 1.442695, %v1339_v42 }
 0x864   :  { %1461 = vpow2.f32 %v1173_v1 }
 0x86a   :  { %v1462_v45 = vpop.eup %1461 }
 0x86b   :  { %v1179_v35 = vadd.f32 1.0, %v1462_v45 }
 0x86d   :  { %1463 = vrcp.f32 %v1179_v35  ;;  %v1193_v53 = vand.u32 2147483648, %v1179_v35  ;;  %v1191_v55 = vand.u32 2147483647, %v1179_v35  ;;  %vm1187_vm13 = vweird.f32 %v1179_v35 }
 0x86f   :  { %v1194_v14 = vor.u32 1.1754944e-38, %v1193_v53  ;;  %vm1192_vm15 = vcmp.eq.f32.partialorder %v1191_v55, 8.507059e+37 }
 0x873   :  { %v1464_v46 = vpop.eup %1463 }
 0x874   :  { %v1183_v48 = vmul.f32 %v1464_v46, %v1179_v35  ;;  %vm1188_vm12 = vweird.f32 %v1464_v46 }
 0x875   :  { %vm1189_vm14 = vmor %vm1187_vm13, %vm1188_vm12 }
 0x876   :  { %v1184_v50 = vsub.f32 1.0, %v1183_v48 }
 0x878   :  { %v1185_v54 = vmul.f32 %v1464_v46, %v1184_v50 }
 0x879   :  { %v1161_v58 = vpop.f32.mrf.mxu2 }
 0x87a   :  { %v1186_v57 = vadd.f32 %v1464_v46, %v1185_v54  ;;  %v1162_v47 = vadd.f32 %v1391_v38, %v1161_v58 }
 0x87c   :  { %v1190_v61 = vsel %vm1189_vm14, %v1464_v46, %v1186_v57  ;;  %v1340_v5 = vmul.f32 -1.702, %v1162_v47 }
 0x87d   :  { %v1195_v62 = vsel %vm1192_vm15, %v1194_v14, %v1190_v61 }
 0x87e   :  { %v1227_v59 = vmul.f32 %v1195_v62, %v1159_v40  ;;  %v1175_v63 = vmul.f32 1.442695, %v1340_v5  ;;  %v1272_v40 = vadd.f32 %v2042_v36, %v1893_v43 }
 0x880   :  { %1342 = vmatmul.msk.f32.vlgmr.msrb.gmra.mxu0 %vm766_vm2, %v1227_v59  ;;  %1465 = vpow2.f32 %v1175_v63 }
 0x886   :  { %v1466_v2 = vpop.eup %1465 }
 0x887   :  { %v1180_v3 = vadd.f32 1.0, %v1466_v2 }
 0x889   :  { %1467 = vrcp.f32 %v1180_v3  ;;  %v1208_v51 = vand.u32 2147483648, %v1180_v3  ;;  %v1206_v49 = vand.u32 2147483647, %v1180_v3  ;;  %vm1202_vm4 = vweird.f32 %v1180_v3 }
 0x88b   :  { %v1209_v10 = vor.u32 1.1754944e-38, %v1208_v51  ;;  %vm1207_vm6 = vcmp.eq.f32.partialorder %v1206_v49, 8.507059e+37 }
 0x88f   :  { %v1468_v52 = vpop.eup %1467 }
 0x890   :  { %v1198_v6 = vmul.f32 %v1468_v52, %v1180_v3  ;;  %vm1203_vm3 = vweird.f32 %v1468_v52 }
 0x891   :  { %vm1204_vm5 = vmor %vm1202_vm4, %vm1203_vm3 }
 0x892   :  { %v1199_v7 = vsub.f32 1.0, %v1198_v6 }
 0x894   :  { %v1200_v0 = vmul.f32 %v1468_v52, %v1199_v7 }
 0x896   :  { %v1201_v12 = vadd.f32 %v1468_v52, %v1200_v0 }
 0x898   :  { %v1205_v11 = vsel %vm1204_vm5, %v1468_v52, %v1201_v12 }
 0x899   :  { %v1164_v16 = vpop.f32.mrf.mxu2  ;;  %v1210_v13 = vsel %vm1207_vm6, %v1209_v10, %v1205_v11 }
 0x89a   :  { %v1165_v8 = vadd.f32 %v1391_v38, %v1164_v16  ;;  %v1228_v4 = vmul.f32 %v1210_v13, %v1162_v47 }
 0x89c   :  { %v1341_v56 = vmul.f32 -1.702, %v1165_v8  ;;  %1343 = vmatmul.msk.f32.gmra.mxu0 %vm766_vm2, %v1228_v4 }
 0x89e   :  { %v1177_v20 = vmul.f32 1.442695, %v1341_v56 }
 0x8a0   :  { %1469 = vpow2.f32 %v1177_v20 }
 0x8a6   :  { %v1470_v21 = vpop.eup %1469 }
 0x8a7   :  { %v1181_v22 = vadd.f32 1.0, %v1470_v21 }
 0x8a9   :  { %1471 = vrcp.f32 %v1181_v22  ;;  %v1223_v28 = vand.u32 2147483648, %v1181_v22  ;;  %v1221_v19 = vand.u32 2147483647, %v1181_v22  ;;  %vm1217_vm8 = vweird.f32 %v1181_v22 }
 0x8ab   :  { %v1224_v23 = vor.u32 1.1754944e-38, %v1223_v28  ;;  %vm1222_vm10 = vcmp.eq.f32.partialorder %v1221_v19, 8.507059e+37 }
 0x8af   :  { %v1472_v26 = vpop.eup %1471 }
 0x8b0   :  { %v1213_v25 = vmul.f32 %v1472_v26, %v1181_v22  ;;  %vm1218_vm7 = vweird.f32 %v1472_v26 }
 0x8b1   :  { %vm1219_vm9 = vmor %vm1217_vm8, %vm1218_vm7 }
 0x8b2   :  { %v1214_v27 = vsub.f32 1.0, %v1213_v25 }
 0x8b4   :  { %v1215_v18 = vmul.f32 %v1472_v26, %v1214_v27 }
 0x8b6   :  { %v1216_v29 = vadd.f32 %v1472_v26, %v1215_v18 }
 0x8b8   :  { %v1220_v30 = vsel %vm1219_vm9, %v1472_v26, %v1216_v29 }
 0x8b9   :  { %v1225_v31 = vsel %vm1222_vm10, %v1224_v23, %v1220_v30 }
 0x8ba   :  { %v1229_v15 = vmul.f32 %v1225_v31, %v1165_v8 }
 0x8bc   :  { %1344 = vmatmul.msk.f32.gmra.mxu0 %vm766_vm2, %v1229_v15 }
 0x8fd   :  { %v1262_v17 = vpop.f32.mrf.mxu0 }
 0x8fe   :  { %v1263_v37 = vadd.f32 %v1392_v33, %v1262_v17 }
 0x900   :  { %v1274_v38 = vadd.f32 %v1271_v24, %v1263_v37 }
 0x902   :  { %1277 = vst.msk [vmem:[%s2100_s17] sm:$0xff] %vm62_vm0, %v1274_v38 }
 0x919   :  { %v1265_v39 = vpop.f32.mrf.mxu0 }
 0x91a   :  { %v1266_v41 = vadd.f32 %v1392_v33, %v1265_v39 }
 0x91c   :  { %v1275_v42 = vadd.f32 %v1272_v40, %v1266_v41 }
 0x91e   :  { %1278 = vst.msk [vmem:[%s2100_s17 + $0x8] sm:$0xff] %vm62_vm0, %v1275_v42 }
 0x939   :  { %v1268_v44 = vpop.f32.mrf.mxu0 }
 0x93a   :  { %v1269_v34 = vadd.f32 %v1392_v33, %v1268_v44 }
 0x93c   :  { %v1276_v1 = vadd.f32 %v1273_v60, %v1269_v34 }
 0x93e   :  { %1279 = vst.msk [vmem:[%s2100_s17 + $0x10] sm:$0x3] %vm69_vm1, %v1276_v1 }

</bundles_post_ra>
